<compile_context>
chip_gen: v7x
topology: tpu7x:2x2x1
jax: 0.10.0
libtpu: 0.0.40
codegen_flags: <defaults>
</compile_context>

<pallas_src>
import math
import functools

import jax
import jax.numpy as jnp
from jax.experimental import pallas as pl
from jax.experimental.pallas import tpu as pltpu


def _conc_kernel(vs_ref, ve_ref, mask_ref,
                 w_qk_ref, w_vs2_ref, s_seg_ref, s_expand_ref, g_ref, b_ref,
                 out_ref, *, n_focus_on, h_dim, n_entity):
    H = h_dim
    E = n_entity
    EH = E * H
    norm = jnp.float32(1.0 / math.sqrt(H))
    NEG = jnp.float32(-1e38)          # finite "masked" sentinel (f32 headroom)

    vs = vs_ref[...]                                  # (BN, H)  f32
    # Single upcast of the (possibly bf16) lane-dense ve tile; at EH=256 the
    # f32 copy is EH*4 B/row (~1 MiB per 1024 rows) and does not bound BN.
    ve = ve_ref[...].astype(jnp.float32)              # (BN, EH)
    mask = mask_ref[...]                              # (BN, E)

    # qk = vs @ (Wq @ Wk^T), replicated across the E entity segments straight
    # off the MXU (weight pre-tiled to (H, EH) on the host).
    qk_tiled = jnp.dot(vs, w_qk_ref[...],
                       preferred_element_type=jnp.float32)            # (BN, EH)

    # attention logits: compat[n,e] = <ve[n,e,:], qk[n,:]> / sqrt(H)
    # full-lane-density VPU multiply, segment-sum over each H-chunk via MXU.
    p_full = ve * qk_tiled                                             # (BN, EH)
    compat = norm * jnp.dot(p_full, s_seg_ref[...],
                            preferred_element_type=jnp.float32)       # (BN, E)
    compat = jnp.where(mask > 0.5, NEG, compat)

    # softmax with torch.nan_to_num(score, 0) semantics (all-dead rows -> 0).
    m = jnp.max(compat, axis=-1, keepdims=True)
    m_safe = jnp.maximum(m, jnp.float32(-1e30))       # fully-masked row guard
    p = jnp.exp(compat - m_safe)                      # masked / all-dead -> 0
    denom = jnp.sum(p, axis=-1, keepdims=True)
    denom_safe = jnp.where(denom > 0.0, denom, 1.0)
    inv = pl.reciprocal(denom_safe, approx=True)      # EUP slot
    inv = inv * (2.0 - denom_safe * inv)              # one Newton step
    score = jnp.where(denom > 0.0, p * inv, 0.0)      # (BN, E)

    # top-k focus selection (descending score, lowest index on ties -- matches
    # jnp.argsort(-score); torch.argsort tie-order parity caveat applies).
    ids = jax.lax.broadcasted_iota(jnp.int32, score.shape, 1).astype(jnp.float32)
    coeffs = []
    s = score
    for _ in range(n_focus_on):
        mmax = jnp.max(s, axis=-1, keepdims=True)
        cand = jnp.where(s == mmax, ids, jnp.float32(E))
        sel = jnp.min(cand, axis=-1, keepdims=True)   # first argmax
        onehot = (ids == sel).astype(jnp.float32)     # (BN, E)
        coeffs.append(onehot)
        s = jnp.where(onehot > 0.5, NEG, s)
    coeffs.append(score)      # score-weighted readout (Wv, Wm[H:] folded in G)

    # out = relu( vs @ [Wf_vs | Wm_vs]
    #           + sum_r (ve * expand(coeff_r)) @ G_r + [bf | bm] )
    acc = jnp.dot(vs, w_vs2_ref[...],
                  preferred_element_type=jnp.float32)                 # (BN, 2H)
    s_expand = s_expand_ref[...]                                      # (E, EH)
    for r, c in enumerate(coeffs):
        # broadcast the per-entity coefficient across its H-chunk via MXU,
        # then one full-density multiply + one K=EH matmul per coefficient set.
        c_tiled = jnp.dot(c, s_expand,
                          preferred_element_type=jnp.float32)         # (BN, EH)
        acc = acc + jnp.dot(ve * c_tiled, g_ref[r],
                            preferred_element_type=jnp.float32)       # (BN, 2H)

    # 2H = 64 < 128 lanes -> masked vst; kept narrow on purpose (padding to
    # 128 would double output HBM bytes; the HBM DMA is contiguous anyway).
    out_ref[...] = jnp.maximum(acc + b_ref[...], 0.0)


def prepare_kernel_params(raw_params, n_focus_on, h_dim, n_entity):
    """Fold / stack torch-layout weights into the constants the kernel needs."""
    wq, wk, wv, motiv_w, motiv_b, fwd_w, fwd_b = raw_params
    H, k, E = h_dim, n_focus_on, n_entity
    EH = E * H
    f32 = jnp.float32

    Wm = motiv_w.T.astype(f32)                 # (2H, H):  [vs | Va] @ Wm
    Wf = fwd_w.T.astype(f32)                   # ((k+1)H, H)
    W_qk = (wq @ wk.T).astype(f32)             # folded query*key  (H, H)

    # vs consumers
    w_qk_tiled = jnp.tile(W_qk, (1, E))                               # (H, EH)
    w_vs2 = jnp.concatenate([Wf[:H], Wm[:H]], axis=1)                 # (H, 2H)

    # 0/1 segment matrices: seg-sum (EH -> E) and per-entity broadcast (E -> EH)
    s_seg = jnp.repeat(jnp.eye(E, dtype=f32), H, axis=0)              # (EH, E)
    s_expand = s_seg.T                                                # (E, EH)

    # Per coefficient-set contribution weights, entity-reduced on the host:
    #   (ve * expand(c)) @ tile(M, (E,1))  ==  (sum_e c_e * ve_e) @ M
    g_list = []
    for r in range(k):                         # r-th focus row feeds v_C half
        g_r = jnp.zeros((EH, 2 * H), f32).at[:, :H].set(
            jnp.tile(Wf[(r + 1) * H:(r + 2) * H], (E, 1)))
        g_list.append(g_r)
    g_m = jnp.zeros((EH, 2 * H), f32).at[:, H:].set(    # score-weighted ve -> Va -> v_M
        jnp.tile((wv @ Wm[H:]).astype(f32), (E, 1)))
    g_list.append(g_m)
    g_all = jnp.stack(g_list, axis=0)                                 # (k+1, EH, 2H)

    b_packed = jnp.concatenate([fwd_b, motiv_b]).reshape(1, 2 * H).astype(f32)
    return w_qk_tiled, w_vs2, s_seg, s_expand, g_all, b_packed


def _choose_blocking(n_rows, block_rows):
    # >= 2 evenly sized blocks whenever possible (feeds both v7x TensorCores
    # and lets block-i DMA overlap block-(i-1) compute); rows multiple of 8.
    num_blocks = max(2 if n_rows > 8 else 1, -(-n_rows // block_rows))
    bn = -(-n_rows // num_blocks)
    bn = -(-bn // 8) * 8
    return bn, num_blocks


def concentration_hete_forward(vs, ve, ve_dead, kernel_params, n_focus_on,
                               block_rows=2048, ve_in_bf16=True):
    """vs: (B,A,1,H), ve: (B,A,E,H), ve_dead: (B,A,E) -> (v_C_final, v_M_final)."""
    # TODO(synk): skip_connect branch not implemented (module default is
    # skip_connect=False; adopt_selfattn asserts in the original torch code).
    B, A, one, H = vs.shape
    assert one == 1
    E = ve.shape[2]
    EH = E * H
    N = B * A

    BN, num_blocks = _choose_blocking(N, block_rows)
    N_pad = BN * num_blocks

    w_qk_tiled, w_vs2, s_seg, s_expand, g_all, b_packed = kernel_params

    ve_dtype = jnp.bfloat16 if ve_in_bf16 else jnp.float32
    vs_f = vs.reshape(N, H).astype(jnp.float32)
    ve_f = ve.reshape(N, EH).astype(ve_dtype)        # lane-dense (N, E*H)
    mask_f = ve_dead.reshape(N, E).astype(jnp.float32)
    if N_pad != N:                                   # ragged tail: pad dead rows
        pad = N_pad - N
        vs_f = jnp.pad(vs_f, ((0, pad), (0, 0)))
        ve_f = jnp.pad(ve_f, ((0, pad), (0, 0)))
        mask_f = jnp.pad(mask_f, ((0, pad), (0, 0)), constant_values=1.0)

    kernel = functools.partial(_conc_kernel, n_focus_on=n_focus_on,
                               h_dim=H, n_entity=E)

    ve_bytes = 2 if ve_in_bf16 else 4
    flops_per_row = (2 * H * EH + 2 * EH * E + 2 * H * 2 * H
                     + (n_focus_on + 1) * (2 * E * EH + 2 * EH * 2 * H)
                     + (n_focus_on + 2) * 2 * EH)
    cost = pl.CostEstimate(
        flops=int(N_pad * flops_per_row),
        transcendentals=int(N_pad * (E + 2)),
        bytes_accessed=int(N_pad * (EH * ve_bytes + H * 4 + E * 4 + 2 * H * 4)))

    # Double-buffered I/O + lane-dense f32 intermediates, with headroom.
    # Kept well below v7x's 64 MiB physical per-TC VMEM.
    vmem_limit = int(min(48 * 1024 * 1024,
                         max(16 * 1024 * 1024, BN * (EH * 48 + 2048))))

    out = pl.pallas_call(
        kernel,
        out_shape=jax.ShapeDtypeStruct((N_pad, 2 * H), jnp.float32),
        grid_spec=pltpu.PrefetchScalarGridSpec(
            num_scalar_prefetch=0,
            grid=(num_blocks,),
            in_specs=[
                pl.BlockSpec((BN, H), lambda i: (i, 0)),               # vs
                pl.BlockSpec((BN, EH), lambda i: (i, 0)),              # ve (lane-dense)
                pl.BlockSpec((BN, E), lambda i: (i, 0)),               # dead mask
                pl.BlockSpec((H, EH), lambda i: (0, 0)),               # Wq@Wk^T tiled
                pl.BlockSpec((H, 2 * H), lambda i: (0, 0)),            # [Wf_vs | Wm_vs]
                pl.BlockSpec((EH, E), lambda i: (0, 0)),               # seg-sum
                pl.BlockSpec((E, EH), lambda i: (0, 0)),               # seg-broadcast
                pl.BlockSpec((n_focus_on + 1, EH, 2 * H), lambda i: (0, 0, 0)),  # G
                pl.BlockSpec((1, 2 * H), lambda i: (0, 0)),            # packed bias
            ],
            out_specs=pl.BlockSpec((BN, 2 * H), lambda i: (i, 0)),     # [v_C | v_M]
        ),
        compiler_params=pltpu.CompilerParams(
            dimension_semantics=("parallel",),
            vmem_limit_bytes=vmem_limit),
        cost_estimate=cost,
    )(vs_f, ve_f, mask_f, w_qk_tiled, w_vs2, s_seg, s_expand, g_all, b_packed)

    out = out[:N]
    vc = out[:, :H].reshape(B, A, H)
    vm = out[:, H:].reshape(B, A, H)
    return vc, vm


def reference_forward(vs, ve, ve_dead, raw_params, n_focus_on):
    """Pure-JAX mirror of the PyTorch forward (skip_connect=False)."""
    wq, wk, wv, mw, mb, fw, fb = raw_params
    H = vs.shape[-1]
    q = vs @ wq                                         # (B,A,1,H)
    k = ve @ wk                                         # (B,A,E,H)
    compat = (q @ jnp.swapaxes(k, -1, -2)) / math.sqrt(H)
    compat = compat[..., 0, :]                          # (B,A,E)
    compat = jnp.where(ve_dead > 0.5, -jnp.inf, compat)
    m = jnp.max(compat, axis=-1, keepdims=True)
    p = jnp.exp(compat - m)
    score = p / jnp.sum(p, axis=-1, keepdims=True)
    score = jnp.nan_to_num(score, nan=0.0)
    va = jnp.einsum('bae,baed->bad', score, ve @ wv)
    v_m = jnp.concatenate([vs[..., 0, :], va], axis=-1)
    vm_final = jax.nn.relu(v_m @ mw.T + mb)
    idx = jnp.argsort(-score, axis=-1)[..., :n_focus_on]
    ve_c = jnp.take_along_axis(ve, idx[..., None], axis=-2)
    v_c = jnp.concatenate([vs, ve_c], axis=-2)
    B, A = v_c.shape[:2]
    v_c_flat = v_c.reshape(B, A, -1)
    vc_final = jax.nn.relu(v_c_flat @ fw.T + fb)
    return vc_final, vm_final


if __name__ == "__main__":
    # Small deterministic shapes implied by the forward:
    #   vs (B, A, 1, H), ve (B, A, E, H), ve_dead (B, A, E)
    # A=9 makes N=18 to exercise the ragged-row padding + multi-block grid.
    B, A, E, H = 2, 9, 8, 32
    n_focus_on = 3

    key = jax.random.PRNGKey(0)
    (k_vs, k_ve, k_mask, k_wq, k_wk, k_wv,
     k_mw, k_mb, k_fw, k_fb) = jax.random.split(key, 10)

    vs = jax.random.normal(k_vs, (B, A, 1, H), jnp.float32)
    ve = jax.random.normal(k_ve, (B, A, E, H), jnp.float32)
    ve_dead = jax.random.bernoulli(k_mask, 0.25, (B, A, E))
    ve_dead = ve_dead.at[0, 0].set(True)     # exercise all-dead / nan_to_num path
    ve_dead = ve_dead.astype(jnp.float32)

    # Deterministic parameter init mirroring torch init (uniform +/- 1/sqrt(last_dim)).
    def uinit(k, shape):
        stdv = 1.0 / math.sqrt(shape[-1])
        return jax.random.uniform(k, shape, jnp.float32, -stdv, stdv)

    wq = uinit(k_wq, (H, H))
    wk = uinit(k_wk, (H, H))
    wv = uinit(k_wv, (H, H))
    motiv_w = uinit(k_mw, (H, 2 * H))                       # nn.Linear(2H -> H).weight
    motiv_b = uinit(k_mb, (H,))
    fwd_w = uinit(k_fw, (H, (n_focus_on + 1) * H))          # nn.Linear((k+1)H -> H).weight
    fwd_b = uinit(k_fb, (H,))

    raw_params = (wq, wk, wv, motiv_w, motiv_b, fwd_w, fwd_b)
    kernel_params = prepare_kernel_params(raw_params, n_focus_on, H, E)

    # (1) fp32-ve path: bit-tight check against the exact reference.
    v_C32, v_M32 = concentration_hete_forward(
        vs, ve, ve_dead, kernel_params, n_focus_on, ve_in_bf16=False)
    v_C32, v_M32 = jax.block_until_ready((v_C32, v_M32))
    v_C_ref, v_M_ref = reference_forward(vs, ve, ve_dead, raw_params, n_focus_on)
    assert v_C32.shape == (B, A, H) and v_M32.shape == (B, A, H)
    assert jnp.allclose(v_M32, v_M_ref, atol=1e-4, rtol=1e-4)
    assert jnp.allclose(v_C32, v_C_ref, atol=1e-4, rtol=1e-4)

    # (2) production default (bf16 ve in HBM): tolerance-aware check against a
    # reference fed the same bf16-rounded ve (guards the top-k flip concern).
    v_Cb, v_Mb = concentration_hete_forward(
        vs, ve, ve_dead, kernel_params, n_focus_on, ve_in_bf16=True)
    v_Cb, v_Mb = jax.block_until_ready((v_Cb, v_Mb))
    ve_q = ve.astype(jnp.bfloat16).astype(jnp.float32)
    v_C_rq, v_M_rq = reference_forward(vs, ve_q, ve_dead, raw_params, n_focus_on)
    assert jnp.allclose(v_Mb, v_M_rq, atol=1e-4, rtol=1e-4)
    assert jnp.allclose(v_Cb, v_C_rq, atol=1e-4, rtol=1e-4)

    print("KERNEL_OK")
</pallas_src>

<mosaic_0001>
module attributes {stable_mosaic.version = 11 : i64} {
  func.func @_conc_kernel(%arg0: i32, %arg1: memref<16x32xf32, #tpu.memory_space<vmem>>, %arg2: memref<16x256xf32, #tpu.memory_space<vmem>>, %arg3: memref<16x8xf32, #tpu.memory_space<vmem>>, %arg4: memref<32x256xf32, #tpu.memory_space<vmem>>, %arg5: memref<32x64xf32, #tpu.memory_space<vmem>>, %arg6: memref<256x8xf32, #tpu.memory_space<vmem>>, %arg7: memref<8x256xf32, #tpu.memory_space<vmem>>, %arg8: memref<4x256x64xf32, #tpu.memory_space<vmem>>, %arg9: memref<1x64xf32, #tpu.memory_space<vmem>>, %arg10: memref<16x64xf32, #tpu.memory_space<vmem>>) attributes {dimension_semantics = [#tpu.dimension_semantics<parallel>], iteration_bounds = array<i64: 2>, scalar_prefetch = 0 : i64, scratch_operands = 0 : i64, tpu.core_type = #tpu.core_type<tc>, window_params = [{transform_indices = @transform_0, window_bounds = array<i64: 16, 32>}, {transform_indices = @transform_1, window_bounds = array<i64: 16, 256>}, {transform_indices = @transform_2, window_bounds = array<i64: 16, 8>}, {pipeline_mode = #tpu.pipeline_mode<synchronous>, transform_indices = @transform_3, window_bounds = array<i64: 32, 256>}, {pipeline_mode = #tpu.pipeline_mode<synchronous>, transform_indices = @transform_4, window_bounds = array<i64: 32, 64>}, {pipeline_mode = #tpu.pipeline_mode<synchronous>, transform_indices = @transform_5, window_bounds = array<i64: 256, 8>}, {pipeline_mode = #tpu.pipeline_mode<synchronous>, transform_indices = @transform_6, window_bounds = array<i64: 8, 256>}, {pipeline_mode = #tpu.pipeline_mode<synchronous>, transform_indices = @transform_7, window_bounds = array<i64: 4, 256, 64>}, {pipeline_mode = #tpu.pipeline_mode<synchronous>, transform_indices = @transform_8, window_bounds = array<i64: 1, 64>}, {transform_indices = @transform_9, window_bounds = array<i64: 16, 64>}]} {
    %c0 = arith.constant 0 : index
    %c0_0 = arith.constant 0 : index
    %0 = vector.load %arg1[%c0, %c0_0] : memref<16x32xf32, #tpu.memory_space<vmem>>, vector<16x32xf32>
    %c0_1 = arith.constant 0 : index
    %c0_2 = arith.constant 0 : index
    %1 = vector.load %arg2[%c0_1, %c0_2] : memref<16x256xf32, #tpu.memory_space<vmem>>, vector<16x256xf32>
    %c0_3 = arith.constant 0 : index
    %c0_4 = arith.constant 0 : index
    %2 = vector.load %arg3[%c0_3, %c0_4] : memref<16x8xf32, #tpu.memory_space<vmem>>, vector<16x8xf32>
    %c0_5 = arith.constant 0 : index
    %c0_6 = arith.constant 0 : index
    %3 = vector.load %arg4[%c0_5, %c0_6] : memref<32x256xf32, #tpu.memory_space<vmem>>, vector<32x256xf32>
    %cst = arith.constant dense<0.000000e+00> : vector<16x256xf32>
    %4 = tpu.matmul %0, %3, %cst {dimension_numbers = #tpu.dot_dimension_numbers<[1], [0], [0], [1], [0, 0, 1, 1], [], []>} : vector<16x32xf32>, vector<32x256xf32>, vector<16x256xf32> -> vector<16x256xf32>
    %5 = arith.mulf %1, %4 : vector<16x256xf32>
    %c0_7 = arith.constant 0 : index
    %c0_8 = arith.constant 0 : index
    %6 = vector.load %arg6[%c0_7, %c0_8] : memref<256x8xf32, #tpu.memory_space<vmem>>, vector<256x8xf32>
    %cst_9 = arith.constant dense<0.000000e+00> : vector<16x8xf32>
    %7 = tpu.matmul %5, %6, %cst_9 {dimension_numbers = #tpu.dot_dimension_numbers<[1], [0], [0], [1], [0, 0, 1, 1], [], []>} : vector<16x256xf32>, vector<256x8xf32>, vector<16x8xf32> -> vector<16x8xf32>
    %cst_10 = arith.constant 0.176776692 : f32
    %8 = vector.broadcast %cst_10 : f32 to vector<16x8xf32>
    %9 = arith.mulf %8, %7 : vector<16x8xf32>
    %cst_11 = arith.constant 5.000000e-01 : f32
    %10 = vector.broadcast %cst_11 : f32 to vector<16x8xf32>
    %11 = arith.cmpf ogt, %2, %10 : vector<16x8xf32>
    %cst_12 = arith.constant -9.99999968E+37 : f32
    %12 = vector.broadcast %cst_12 : f32 to vector<16x8xf32>
    %13 = arith.select %11, %12, %9 : vector<16x8xi1>, vector<16x8xf32>
    %cst_13 = arith.constant dense<0xFF800000> : vector<16xf32>
    %14 = vector.multi_reduction <maximumf>, %13, %cst_13 [1] : vector<16x8xf32> to vector<16xf32>
    %15 = vector.shape_cast %14 : vector<16xf32> to vector<16x1xf32>
    %cst_14 = arith.constant -1.000000e+30 : f32
    %16 = vector.broadcast %cst_14 : f32 to vector<16x1xf32>
    %17 = arith.maximumf %15, %16 : vector<16x1xf32>
    %18 = vector.broadcast %17 : vector<16x1xf32> to vector<16x8xf32>
    %19 = arith.subf %13, %18 : vector<16x8xf32>
    %20 = math.exp %19 : vector<16x8xf32>
    %cst_15 = arith.constant dense<0.000000e+00> : vector<16xf32>
    %21 = vector.multi_reduction <add>, %20, %cst_15 [1] : vector<16x8xf32> to vector<16xf32>
    %22 = vector.shape_cast %21 : vector<16xf32> to vector<16x1xf32>
    %cst_16 = arith.constant 0.000000e+00 : f32
    %23 = vector.broadcast %cst_16 : f32 to vector<16x1xf32>
    %24 = arith.cmpf ogt, %22, %23 : vector<16x1xf32>
    %cst_17 = arith.constant 1.000000e+00 : f32
    %25 = vector.broadcast %cst_17 : f32 to vector<16x1xf32>
    %26 = arith.select %24, %22, %25 : vector<16x1xi1>, vector<16x1xf32>
    %27 = tpu.reciprocal %26 {approx = true} : vector<16x1xf32> -> vector<16x1xf32>
    %28 = arith.mulf %26, %27 : vector<16x1xf32>
    %cst_18 = arith.constant 2.000000e+00 : f32
    %29 = vector.broadcast %cst_18 : f32 to vector<16x1xf32>
    %30 = arith.subf %29, %28 : vector<16x1xf32>
    %31 = arith.mulf %27, %30 : vector<16x1xf32>
    %cst_19 = arith.constant 0.000000e+00 : f32
    %32 = vector.broadcast %cst_19 : f32 to vector<16x1xf32>
    %33 = arith.cmpf ogt, %22, %32 : vector<16x1xf32>
    %34 = vector.broadcast %31 : vector<16x1xf32> to vector<16x8xf32>
    %35 = arith.mulf %20, %34 : vector<16x8xf32>
    %cst_20 = arith.constant 0.000000e+00 : f32
    %36 = vector.shape_cast %33 : vector<16x1xi1> to vector<16x1xi1>
    %37 = vector.broadcast %36 : vector<16x1xi1> to vector<16x8xi1>
    %38 = vector.broadcast %cst_20 : f32 to vector<16x8xf32>
    %39 = arith.select %37, %35, %38 : vector<16x8xi1>, vector<16x8xf32>
    %40 = tpu.iota {dimensions = array<i32: 1>} : vector<16x8xi32>
    %41 = arith.sitofp %40 : vector<16x8xi32> to vector<16x8xf32>
    %cst_21 = arith.constant dense<0xFF800000> : vector<16xf32>
    %42 = vector.multi_reduction <maximumf>, %39, %cst_21 [1] : vector<16x8xf32> to vector<16xf32>
    %43 = vector.shape_cast %42 : vector<16xf32> to vector<16x1xf32>
    %44 = vector.broadcast %43 : vector<16x1xf32> to vector<16x8xf32>
    %45 = arith.cmpf oeq, %39, %44 : vector<16x8xf32>
    %cst_22 = arith.constant 8.000000e+00 : f32
    %46 = vector.broadcast %cst_22 : f32 to vector<16x8xf32>
    %47 = arith.select %45, %41, %46 : vector<16x8xi1>, vector<16x8xf32>
    %cst_23 = arith.constant dense<0x7F800000> : vector<16xf32>
    %48 = vector.multi_reduction <minimumf>, %47, %cst_23 [1] : vector<16x8xf32> to vector<16xf32>
    %49 = vector.shape_cast %48 : vector<16xf32> to vector<16x1xf32>
    %50 = vector.broadcast %49 : vector<16x1xf32> to vector<16x8xf32>
    %51 = arith.cmpf oeq, %41, %50 : vector<16x8xf32>
    %52 = arith.extui %51 : vector<16x8xi1> to vector<16x8xi32>
    %53 = arith.sitofp %52 : vector<16x8xi32> to vector<16x8xf32>
    %cst_24 = arith.constant 5.000000e-01 : f32
    %54 = vector.broadcast %cst_24 : f32 to vector<16x8xf32>
    %55 = arith.cmpf ogt, %53, %54 : vector<16x8xf32>
    %cst_25 = arith.constant -9.99999968E+37 : f32
    %56 = vector.broadcast %cst_25 : f32 to vector<16x8xf32>
    %57 = arith.select %55, %56, %39 : vector<16x8xi1>, vector<16x8xf32>
    %cst_26 = arith.constant dense<0xFF800000> : vector<16xf32>
    %58 = vector.multi_reduction <maximumf>, %57, %cst_26 [1] : vector<16x8xf32> to vector<16xf32>
    %59 = vector.shape_cast %58 : vector<16xf32> to vector<16x1xf32>
    %60 = vector.broadcast %59 : vector<16x1xf32> to vector<16x8xf32>
    %61 = arith.cmpf oeq, %57, %60 : vector<16x8xf32>
    %cst_27 = arith.constant 8.000000e+00 : f32
    %62 = vector.broadcast %cst_27 : f32 to vector<16x8xf32>
    %63 = arith.select %61, %41, %62 : vector<16x8xi1>, vector<16x8xf32>
    %cst_28 = arith.constant dense<0x7F800000> : vector<16xf32>
    %64 = vector.multi_reduction <minimumf>, %63, %cst_28 [1] : vector<16x8xf32> to vector<16xf32>
    %65 = vector.shape_cast %64 : vector<16xf32> to vector<16x1xf32>
    %66 = vector.broadcast %65 : vector<16x1xf32> to vector<16x8xf32>
    %67 = arith.cmpf oeq, %41, %66 : vector<16x8xf32>
    %68 = arith.extui %67 : vector<16x8xi1> to vector<16x8xi32>
    %69 = arith.sitofp %68 : vector<16x8xi32> to vector<16x8xf32>
    %cst_29 = arith.constant 5.000000e-01 : f32
    %70 = vector.broadcast %cst_29 : f32 to vector<16x8xf32>
    %71 = arith.cmpf ogt, %69, %70 : vector<16x8xf32>
    %cst_30 = arith.constant -9.99999968E+37 : f32
    %72 = vector.broadcast %cst_30 : f32 to vector<16x8xf32>
    %73 = arith.select %71, %72, %57 : vector<16x8xi1>, vector<16x8xf32>
    %cst_31 = arith.constant dense<0xFF800000> : vector<16xf32>
    %74 = vector.multi_reduction <maximumf>, %73, %cst_31 [1] : vector<16x8xf32> to vector<16xf32>
    %75 = vector.shape_cast %74 : vector<16xf32> to vector<16x1xf32>
    %76 = vector.broadcast %75 : vector<16x1xf32> to vector<16x8xf32>
    %77 = arith.cmpf oeq, %73, %76 : vector<16x8xf32>
    %cst_32 = arith.constant 8.000000e+00 : f32
    %78 = vector.broadcast %cst_32 : f32 to vector<16x8xf32>
    %79 = arith.select %77, %41, %78 : vector<16x8xi1>, vector<16x8xf32>
    %cst_33 = arith.constant dense<0x7F800000> : vector<16xf32>
    %80 = vector.multi_reduction <minimumf>, %79, %cst_33 [1] : vector<16x8xf32> to vector<16xf32>
    %81 = vector.shape_cast %80 : vector<16xf32> to vector<16x1xf32>
    %82 = vector.broadcast %81 : vector<16x1xf32> to vector<16x8xf32>
    %83 = arith.cmpf oeq, %41, %82 : vector<16x8xf32>
    %84 = arith.extui %83 : vector<16x8xi1> to vector<16x8xi32>
    %85 = arith.sitofp %84 : vector<16x8xi32> to vector<16x8xf32>
    %c0_34 = arith.constant 0 : index
    %c0_35 = arith.constant 0 : index
    %86 = vector.load %arg5[%c0_34, %c0_35] : memref<32x64xf32, #tpu.memory_space<vmem>>, vector<32x64xf32>
    %cst_36 = arith.constant dense<0.000000e+00> : vector<16x64xf32>
    %87 = tpu.matmul %0, %86, %cst_36 {dimension_numbers = #tpu.dot_dimension_numbers<[1], [0], [0], [1], [0, 0, 1, 1], [], []>} : vector<16x32xf32>, vector<32x64xf32>, vector<16x64xf32> -> vector<16x64xf32>
    %c0_37 = arith.constant 0 : index
    %c0_38 = arith.constant 0 : index
    %88 = vector.load %arg7[%c0_37, %c0_38] : memref<8x256xf32, #tpu.memory_space<vmem>>, vector<8x256xf32>
    %cst_39 = arith.constant dense<0.000000e+00> : vector<16x256xf32>
    %89 = tpu.matmul %53, %88, %cst_39 {dimension_numbers = #tpu.dot_dimension_numbers<[1], [0], [0], [1], [0, 0, 1, 1], [], []>} : vector<16x8xf32>, vector<8x256xf32>, vector<16x256xf32> -> vector<16x256xf32>
    %90 = arith.mulf %1, %89 : vector<16x256xf32>
    %c0_40 = arith.constant 0 : index
    %c0_41 = arith.constant 0 : index
    %c0_42 = arith.constant 0 : index
    %91 = vector.load %arg8[%c0_40, %c0_41, %c0_42] : memref<4x256x64xf32, #tpu.memory_space<vmem>>, vector<1x256x64xf32>
    %92 = vector.shape_cast %91 : vector<1x256x64xf32> to vector<256x64xf32>
    %cst_43 = arith.constant dense<0.000000e+00> : vector<16x64xf32>
    %93 = tpu.matmul %90, %92, %cst_43 {dimension_numbers = #tpu.dot_dimension_numbers<[1], [0], [0], [1], [0, 0, 1, 1], [], []>} : vector<16x256xf32>, vector<256x64xf32>, vector<16x64xf32> -> vector<16x64xf32>
    %94 = arith.addf %87, %93 : vector<16x64xf32>
    %cst_44 = arith.constant dense<0.000000e+00> : vector<16x256xf32>
    %95 = tpu.matmul %69, %88, %cst_44 {dimension_numbers = #tpu.dot_dimension_numbers<[1], [0], [0], [1], [0, 0, 1, 1], [], []>} : vector<16x8xf32>, vector<8x256xf32>, vector<16x256xf32> -> vector<16x256xf32>
    %96 = arith.mulf %1, %95 : vector<16x256xf32>
    %c1 = arith.constant 1 : index
    %c0_45 = arith.constant 0 : index
    %c0_46 = arith.constant 0 : index
    %97 = vector.load %arg8[%c1, %c0_45, %c0_46] : memref<4x256x64xf32, #tpu.memory_space<vmem>>, vector<1x256x64xf32>
    %98 = vector.shape_cast %97 : vector<1x256x64xf32> to vector<256x64xf32>
    %cst_47 = arith.constant dense<0.000000e+00> : vector<16x64xf32>
    %99 = tpu.matmul %96, %98, %cst_47 {dimension_numbers = #tpu.dot_dimension_numbers<[1], [0], [0], [1], [0, 0, 1, 1], [], []>} : vector<16x256xf32>, vector<256x64xf32>, vector<16x64xf32> -> vector<16x64xf32>
    %100 = arith.addf %94, %99 : vector<16x64xf32>
    %cst_48 = arith.constant dense<0.000000e+00> : vector<16x256xf32>
    %101 = tpu.matmul %85, %88, %cst_48 {dimension_numbers = #tpu.dot_dimension_numbers<[1], [0], [0], [1], [0, 0, 1, 1], [], []>} : vector<16x8xf32>, vector<8x256xf32>, vector<16x256xf32> -> vector<16x256xf32>
    %102 = arith.mulf %1, %101 : vector<16x256xf32>
    %c2 = arith.constant 2 : index
    %c0_49 = arith.constant 0 : index
    %c0_50 = arith.constant 0 : index
    %103 = vector.load %arg8[%c2, %c0_49, %c0_50] : memref<4x256x64xf32, #tpu.memory_space<vmem>>, vector<1x256x64xf32>
    %104 = vector.shape_cast %103 : vector<1x256x64xf32> to vector<256x64xf32>
    %cst_51 = arith.constant dense<0.000000e+00> : vector<16x64xf32>
    %105 = tpu.matmul %102, %104, %cst_51 {dimension_numbers = #tpu.dot_dimension_numbers<[1], [0], [0], [1], [0, 0, 1, 1], [], []>} : vector<16x256xf32>, vector<256x64xf32>, vector<16x64xf32> -> vector<16x64xf32>
    %106 = arith.addf %100, %105 : vector<16x64xf32>
    %cst_52 = arith.constant dense<0.000000e+00> : vector<16x256xf32>
    %107 = tpu.matmul %39, %88, %cst_52 {dimension_numbers = #tpu.dot_dimension_numbers<[1], [0], [0], [1], [0, 0, 1, 1], [], []>} : vector<16x8xf32>, vector<8x256xf32>, vector<16x256xf32> -> vector<16x256xf32>
    %108 = arith.mulf %1, %107 : vector<16x256xf32>
    %c3 = arith.constant 3 : index
    %c0_53 = arith.constant 0 : index
    %c0_54 = arith.constant 0 : index
    %109 = vector.load %arg8[%c3, %c0_53, %c0_54] : memref<4x256x64xf32, #tpu.memory_space<vmem>>, vector<1x256x64xf32>
    %110 = vector.shape_cast %109 : vector<1x256x64xf32> to vector<256x64xf32>
    %cst_55 = arith.constant dense<0.000000e+00> : vector<16x64xf32>
    %111 = tpu.matmul %108, %110, %cst_55 {dimension_numbers = #tpu.dot_dimension_numbers<[1], [0], [0], [1], [0, 0, 1, 1], [], []>} : vector<16x256xf32>, vector<256x64xf32>, vector<16x64xf32> -> vector<16x64xf32>
    %112 = arith.addf %106, %111 : vector<16x64xf32>
    %c0_56 = arith.constant 0 : index
    %c0_57 = arith.constant 0 : index
    %113 = vector.load %arg9[%c0_56, %c0_57] : memref<1x64xf32, #tpu.memory_space<vmem>>, vector<1x64xf32>
    %114 = vector.broadcast %113 : vector<1x64xf32> to vector<16x64xf32>
    %115 = arith.addf %112, %114 : vector<16x64xf32>
    %cst_58 = arith.constant 0.000000e+00 : f32
    %116 = vector.broadcast %cst_58 : f32 to vector<16x64xf32>
    %117 = arith.maximumf %115, %116 : vector<16x64xf32>
    %c0_59 = arith.constant 0 : index
    %c0_60 = arith.constant 0 : index
    %118 = vector.load %arg10[%c0_59, %c0_60] : memref<16x64xf32, #tpu.memory_space<vmem>>, vector<16x64xf32>
    tpu.vector_store %arg10[%c0_59, %c0_60], %117 {strides = array<i32>} : memref<16x64xf32, #tpu.memory_space<vmem>>, vector<16x64xf32>,
    return
  }
  func.func @transform_0(%arg0: i32) -> (i32, i32) {
    %c0_i32 = arith.constant 0 : i32
    %c0_i32_0 = arith.constant 0 : i32
    return %arg0, %c0_i32 : i32, i32
  }
  func.func @transform_1(%arg0: i32) -> (i32, i32) {
    %c0_i32 = arith.constant 0 : i32
    %c0_i32_0 = arith.constant 0 : i32
    return %arg0, %c0_i32 : i32, i32
  }
  func.func @transform_2(%arg0: i32) -> (i32, i32) {
    %c0_i32 = arith.constant 0 : i32
    %c0_i32_0 = arith.constant 0 : i32
    return %arg0, %c0_i32 : i32, i32
  }
  func.func @transform_3(%arg0: i32) -> (i32, i32) {
    %c0_i32 = arith.constant 0 : i32
    %c0_i32_0 = arith.constant 0 : i32
    %c0_i32_1 = arith.constant 0 : i32
    return %c0_i32, %c0_i32_0 : i32, i32
  }
  func.func @transform_4(%arg0: i32) -> (i32, i32) {
    %c0_i32 = arith.constant 0 : i32
    %c0_i32_0 = arith.constant 0 : i32
    %c0_i32_1 = arith.constant 0 : i32
    return %c0_i32, %c0_i32_0 : i32, i32
  }
  func.func @transform_5(%arg0: i32) -> (i32, i32) {
    %c0_i32 = arith.constant 0 : i32
    %c0_i32_0 = arith.constant 0 : i32
    %c0_i32_1 = arith.constant 0 : i32
    return %c0_i32, %c0_i32_0 : i32, i32
  }
  func.func @transform_6(%arg0: i32) -> (i32, i32) {
    %c0_i32 = arith.constant 0 : i32
    %c0_i32_0 = arith.constant 0 : i32
    %c0_i32_1 = arith.constant 0 : i32
    return %c0_i32, %c0_i32_0 : i32, i32
  }
  func.func @transform_7(%arg0: i32) -> (i32, i32, i32) {
    %c0_i32 = arith.constant 0 : i32
    %c0_i32_0 = arith.constant 0 : i32
    %c0_i32_1 = arith.constant 0 : i32
    %c0_i32_2 = arith.constant 0 : i32
    return %c0_i32, %c0_i32_0, %c0_i32_1 : i32, i32, i32
  }
  func.func @transform_8(%arg0: i32) -> (i32, i32) {
    %c0_i32 = arith.constant 0 : i32
    %c0_i32_0 = arith.constant 0 : i32
    %c0_i32_1 = arith.constant 0 : i32
    return %c0_i32, %c0_i32_0 : i32, i32
  }
  func.func @transform_9(%arg0: i32) -> (i32, i32) {
    %c0_i32 = arith.constant 0 : i32
    %c0_i32_0 = arith.constant 0 : i32
    return %arg0, %c0_i32 : i32, i32
  }
}

</mosaic_0001>

<bundles_post_ra>
// kernel: tpu_custom_call.1
= control target key start
LH: loop header
LB: loop body
LE: loop exit
PB: predicated region body
PF: predicated region fallthrough
CT: control target
= control target key end

     0   :  { %14 = vsyncpa [#allocation3], 0  ;;  %s3166_s0 = inlined_call_operand.vmem [shape: f32[32,32], index: 0, kind: input, shape index: {}]   ;;  %s3167_s1 = inlined_call_operand.vmem [shape: f32[32,256], index: 1, kind: input, shape index: {}]   ;;  %s3168_s2 = inlined_call_operand.vmem [shape: f32[32,8], index: 2, kind: input, shape index: {}]   ;;  %s3169_s3 = inlined_call_operand.vmem [shape: f32[32,256], index: 3, kind: input, shape index: {}]   ;;  %s3170_s4 = inlined_call_operand.vmem [shape: f32[32,64], index: 4, kind: input, shape index: {}]   ;;  %s3171_s5 = inlined_call_operand.vmem [shape: f32[256,8], index: 5, kind: input, shape index: {}]   ;;  %s3172_s6 = inlined_call_operand.vmem [shape: f32[8,256], index: 6, kind: input, shape index: {}]   ;;  %s3173_s7 = inlined_call_operand.vmem [shape: f32[4,256,64], index: 7, kind: input, shape index: {}]   ;;  %s3174_s8 = inlined_call_operand.vmem [shape: f32[1,64], index: 8, kind: input, shape index: {}]   ;;  %s3175_s9 = inlined_call_operand.hbm [shape: f32[32,64], index: 9, kind: output, shape index: {}]  }
   0x1   :  { %16 = vsyncpa [#allocation3 + $0x1], 0  ;;  %s2381_s30 = smov 0   ;;  %s2383_s10 = smov 0  }
   0x2   :  { %s2385_s11 = smov 0   ;;  %s2387_s12 = smov 0  }
   0x3 LB: > { %s2402_s13 = sadd.s32 4294967295, %s2325_s12   ;;  %s1696_s14 = sadd.s32 4294967294, %s2325_s12   ;;  %s2325_s12 = sphi %s2387_s12, %s3181_s12   ;;  %s2321_s11 = sphi %s2385_s11, %s3180_s11   ;;  %s2317_s10 = sphi %s2383_s10, %s3179_s10   ;;  %s2313_s30 = sphi %s2381_s30, %s3178_s30  }
   0x4   : > { %s2406_s15 = sadd.s32 1, %s2325_s12   ;;  %s233_s16 = sadd.s32 1, %s2321_s11 }
   0x5   : > { %s230_s17 = ssub.s32 %s2325_s12, %s2406_s15  ;;  %p243_p0 = scmp.ne.s32.totalorder %s2321_s11, %s2317_s10 }
   0x6   : > { %p231_p1 = scmp.eq.s32.totalorder %s230_s17, 0  ;;  %p244_p2 = scmp.eq.s32.totalorder %s2402_s13, 1 }
   0x7   : > { %p249_p3 = scmp.ne.s32.totalorder %s2317_s10, %s2313_s30  ;;  %p250_p4 = scmp.eq.s32.totalorder %s1696_s14, 1 }
   0x8   : > { %s2417_s18 = scalar_select %p231_p1, %s2321_s11, %s233_s16  }
   0x9   : > { %p2419_p5 = por %p244_p2, %p243_p0  ;;  %p2423_p6 = por %p250_p4, %p249_p3 }
   0xa   : > { %p1699_p7 = scmp.ge.s32.totalorder %s2325_s12, 1  ;;  %p314_p8 = scmp.lt.s32.totalorder %s2325_s12, 3 }
   0xc   : > { %p315_p9 = pnand %p1699_p7, %p314_p8 }
   0xd   : > { %v390_v0 = vld [vmem:[%s3169_s3 + $0x8] sm:$0xff] (!%p315_p9)  ;;  %v392_v1 = vld [vmem:[%s3169_s3 + $0x18] sm:$0xff] (!%p315_p9)  ;;  %v389_v2 = vld [vmem:[%s3169_s3] sm:$0xff] (!%p315_p9)  ;;  %s1701_s27 = sshll.u32 (!%p315_p9), %s2402_s13, 1  ;;  %v2327_v7 = vmov (!%p315_p9), 0.0   ;;  %vm397_vm0 = vcmask (!%p315_p9), 261120  }
   0xe   : > { %318 = sbr.rel (%p315_p9) target bundleno = 2338 (0x922), region = 56  ;;  %v2037_v3 = vpack.c.bf16 (!%p315_p9), %v392_v1, %v390_v0  ;;  %v391_v4 = vld [vmem:[%s3169_s3 + $0x10] sm:$0xff] (!%p315_p9)  ;;  %v394_v5 = vld [vmem:[%s3169_s3 + $0x28] sm:$0xff] (!%p315_p9)  ;;  %v396_v6 = vld [vmem:[%s3169_s3 + $0x38] sm:$0xff] (!%p315_p9)  ;;  %468 = vmatprep.mubr.f32.mxu0 (!%p315_p9), %v2327_v7  ;;  %p362_p10 = scmp.lt.s32.totalorder (!%p315_p9), %s1701_s27, 3  ;;  %vm598_vm2 = vcmask (!%p315_p9), 64512  }
   0xf   : > { %v2039_v8 = vpack.c.bf16 (!%p315_p9), %v391_v4, %v389_v2  ;;  %v2041_v9 = vpack.c.bf16 (!%p315_p9), %v396_v6, %v394_v5  ;;  %v393_v10 = vld [vmem:[%s3169_s3 + $0x20] sm:$0xff] (!%p315_p9)  ;;  %v395_v11 = vld [vmem:[%s3169_s3 + $0x30] sm:$0xff] (!%p315_p9)  ;;  %v502_v13 = vld [vmem:[%s3171_s5 + $0x88] sm:$0xff] (!%p315_p9)  ;;  %s358_s22 = sand.u32 (!%p315_p9), 1, %s2317_s10  }
  0x10   : > { %v501_v12 = vld [vmem:[%s3171_s5 + $0x80] sm:$0xff] (!%p315_p9)  ;;  %2038 = vmatprep.subr.bf16.mxu0 (!%p315_p9), %v2037_v3  ;;  %v486_v15 = vld [vmem:[%s3171_s5 + $0x8] sm:$0xff] (!%p315_p9)  ;;  %v2043_v16 = vpack.c.bf16 (!%p315_p9), %v395_v11, %v393_v10  ;;  %v503_v19 = vld [vmem:[%s3171_s5 + $0x90] sm:$0xff] (!%p315_p9)  ;;  %s3125_s17 = scalar_lea.sflag (!%p315_p9), [#allocation3], %s358_s22 }
  0x11   : > { %v485_v14 = vld [vmem:[%s3171_s5] sm:$0xff] (!%p315_p9)  ;;  %2040 = vmatpush1.bf16.msra.mxu0 (!%p315_p9), %v2039_v8  ;;  %v2045_v17 = vpack.c.bf16 (!%p315_p9), %v502_v13, %v501_v12  ;;  %v504_v20 = vld [vmem:[%s3171_s5 + $0x98] sm:$0xff] (!%p315_p9)  ;;  %v487_v21 = vld [vmem:[%s3171_s5 + $0x10] sm:$0xff] (!%p315_p9) }
  0x12   : > { %v2047_v18 = vpack.c.bf16 (!%p315_p9), %v486_v15, %v485_v14  ;;  %2042 = vmatprep.subr.bf16.mxu0 (!%p315_p9), %v2041_v9  ;;  %v2049_v22 = vpack.c.bf16 (!%p315_p9), %v504_v20, %v503_v19  ;;  %v488_v23 = vld [vmem:[%s3171_s5 + $0x18] sm:$0xff] (!%p315_p9)  ;;  %v505_v24 = vld [vmem:[%s3171_s5 + $0xa0] sm:$0xff] (!%p315_p9)  ;;  %v506_v25 = vld [vmem:[%s3171_s5 + $0xa8] sm:$0xff] (!%p315_p9) }
  0x13   : > { %2046 = vmatprep.subr.bf16.mxu1 (!%p315_p9), %v2045_v17  ;;  %v2051_v26 = vpack.c.bf16 (!%p315_p9), %v488_v23, %v487_v21  ;;  %v2053_v28 = vpack.c.bf16 (!%p315_p9), %v506_v25, %v505_v24  ;;  %v489_v29 = vld [vmem:[%s3171_s5 + $0x20] sm:$0xff] (!%p315_p9)  ;;  %v490_v30 = vld [vmem:[%s3171_s5 + $0x28] sm:$0xff] (!%p315_p9)  ;;  %v507_v31 = vld [vmem:[%s3171_s5 + $0xb0] sm:$0xff] (!%p315_p9) }
  0x14   : > { %2048 = vmatpush3.bf16.msra.mxu1 (!%p315_p9), %v2047_v18  ;;  %v508_v32 = vld [vmem:[%s3171_s5 + $0xb8] sm:$0xff] (!%p315_p9)  ;;  %v2055_v33 = vpack.c.bf16 (!%p315_p9), %v490_v30, %v489_v29  ;;  %v491_v36 = vld [vmem:[%s3171_s5 + $0x30] sm:$0xff] (!%p315_p9)  ;;  %v509_v38 = vld [vmem:[%s3171_s5 + $0xc0] sm:$0xff] (!%p315_p9) }
  0x15   : > { %s3183_s27 = smov (!%p362_p10, %s1701_s27), 3  ;;  %2044 = vmatpush1.bf16.msra.mxu0 %v2043_v16  ;;  %2050 = vmatprep.subr.bf16.mxu1 %v2049_v22  ;;  %v2057_v35 = vpack.c.bf16 %v508_v32, %v507_v31  ;;  %v492_v37 = vld [vmem:[%s3171_s5 + $0x38] sm:$0xff]  ;;  %v510_v39 = vld [vmem:[%s3171_s5 + $0xc8] sm:$0xff]  ;;  %v493_v42 = vld [vmem:[%s3171_s5 + $0x40] sm:$0xff] }
  0x16   : > { %s1702_s14 = sshll.u32 %s3183_s27, 3  ;;  %v2059_v40 = vpack.c.bf16 %v492_v37, %v491_v36  ;;  %v2061_v41 = vpack.c.bf16 %v510_v39, %v509_v38  ;;  %v494_v43 = vld [vmem:[%s3171_s5 + $0x48] sm:$0xff]  ;;  %v511_v44 = vld [vmem:[%s3171_s5 + $0xd0] sm:$0xff]  ;;  %v512_v45 = vld [vmem:[%s3171_s5 + $0xd8] sm:$0xff]  ;;  %s1828_s23 = sshll.u32 %s3183_s27, 4 }
  0x17   : > { %s365_s28 = scalar_lea.vmem %s3166_s0, %s1702_s14  ;;  %v2063_v46 = vpack.c.bf16 %v494_v43, %v493_v42  ;;  %v2065_v47 = vpack.c.bf16 %v512_v45, %v511_v44  ;;  %v495_v48 = vld [vmem:[%s3171_s5 + $0x50] sm:$0xff]  ;;  %v496_v49 = vld [vmem:[%s3171_s5 + $0x58] sm:$0xff]  ;;  %v513_v50 = vld [vmem:[%s3171_s5 + $0xe0] sm:$0xff]  ;;  %s372_s25 = scalar_lea.vmem %s3167_s1, %s1828_s23 }
  0x18   : > { %v2493_v27 = vld [vmem:[%s365_s28] sm:$0xff]  ;;  %2052 = vmatpush3.bf16.msra.mxu1 %v2051_v26  ;;  %v2510_v34 = vld [vmem:[%s365_s28 + $0x8] sm:$0xff]  ;;  %v2067_v52 = vpack.c.bf16 %v496_v49, %v495_v48  ;;  %v515_v57 = vld [vmem:[%s3171_s5 + $0xf0] sm:$0xff]  ;;  %s378_s16 = scalar_lea.vmem %s3168_s2, %s1702_s14  ;;  %s1700_s28 = sshll.u32 %s358_s22, 4 }
  0x19   : > { %1708 = vmatmul.mubr.msk.f32.vlgmr.msra.gmra.mrb[0].mxu0 %vm397_vm0, %v2493_v27  ;;  %2054 = vmatprep.subr.bf16.mxu1 %v2053_v28  ;;  %v514_v51 = vld [vmem:[%s3171_s5 + $0xe8] sm:$0xff]  ;;  %v497_v54 = vld [vmem:[%s3171_s5 + $0x60] sm:$0xff]  ;;  %v516_v58 = vld [vmem:[%s3171_s5 + $0xf8] sm:$0xff]  ;;  %s360_s26 = scalar_lea.vmem [#allocation2], %s1700_s28 }
  0x1a   : > { %474 = vmatprep.mubr.f32.mxu0 %v2327_v7  ;;  %v2069_v53 = vpack.c.bf16 %v514_v51, %v513_v50  ;;  %v498_v55 = vld [vmem:[%s3171_s5 + $0x68] sm:$0xff]  ;;  %v2073_v59 = vpack.c.bf16 %v516_v58, %v515_v57  ;;  %v499_v60 = vld [vmem:[%s3171_s5 + $0x70] sm:$0xff]  ;;  %v500_v61 = vld [vmem:[%s3171_s5 + $0x78] sm:$0xff]  ;;  %v639_v58 = vlaneseq  ;;  %s1610_s29 = sshll.u32 %s360_s26, 4  ;;  %s3123_s29 = int_to_ptr.vmem [resolvable:$true] %s1610_s29 }
  0x1b   : > { %v2071_v56 = vpack.c.bf16 %v498_v55, %v497_v54  ;;  %v2075_v62 = vpack.c.bf16 %v500_v61, %v499_v60  ;;  %v2573_v63 = vld [vmem:[%s372_s25 + $0x8] sm:$0xff]  ;;  %v2575_v0 = vld [vmem:[%s372_s25] sm:$0xff]  ;;  %v2579_v5 = vld [vmem:[%s372_s25 + $0x18] sm:$0xff]  ;;  %s2263_s21 = scalar_lea.vmem %s3123_s29, 256 }
  0x1c   : > { %2056 = vmatpush3.bf16.msra.mxu1 %v2055_v33  ;;  %v2581_v6 = vld [vmem:[%s372_s25 + $0x10] sm:$0xff]  ;;  %v387_v13 = vld [vmem:[%s378_s16] sm:$0xff]  ;;  %v388_v18 = vld [vmem:[%s378_s16 + $0x8] sm:$0xff]  ;;  %s1829_s25 = sshll.u32 %s2402_s13, 8  ;;  %p2264_p11 = scmp.ne.s32.totalorder %s3123_s29, %s2263_s21 }
  0x1d   : > { %1709 = vmatmul.mubr.msk.f32.gmra.mrb[2].mxu0 %vm397_vm0, %v2510_v34  ;;  %2058 = vmatprep.subr.bf16.mxu1 %v2057_v35  ;;  %vm594_vm1 = vcmp.gt.f32.partialorder %v387_v13, 0.5  ;;  %vm595_vm3 = vcmp.gt.f32.partialorder %v388_v18, 0.5  ;;  %v825_v18 = vld [vmem:[%s3173_s7 + $0x80] sm:$0xff]  ;;  %s3121_s14 = scalar_lea.hbm %s3175_s9, %s1829_s25  ;;  %s2328_s13 = smov [#allocation2]  }
  0x1e   : > { %792 = vmatprep.mubr.f32.mxu0 %v2327_v7  ;;  %p2265_p12 = pnand %p2264_p11, %p2419_p5  ;;  %s2267_s23 = sshll.u32 %s2328_s13, 4  ;;  %s2268_s23 = int_to_ptr.vmem [resolvable:$false] %s2267_s23 }
  0x1f   : > { %s2269_s24 = scalar_lea.vmem %s2268_s23, 512  ;;  %p2270_p0 = scmp.lt.s32.totalorder %s3123_s29, %s2268_s23 }
  0x20   : > { %2060 = vmatpush3.bf16.msra.mxu1 %v2059_v40  ;;  %p2266_p13 = pneg %p2265_p12  ;;  %p2271_p1 = scmp.lt.s32.totalorder %s2269_s24, %s2263_s21 }
  0x21   : > { %2062 = vmatprep.subr.bf16.mxu1 %v2061_v41 }
  0x22   : > { %p2272_p2 = por %p2271_p1, %p2270_p0 }
  0x24   : > { %2064 = vmatpush3.bf16.msra.mxu1 %v2063_v46  ;;  %p2273_p3 = pnand %p2272_p2, %p2266_p13 }
  0x25   : > { %2066 = vmatprep.subr.bf16.mxu1 %v2065_v47 }
  0x28   : > { %2068 = vmatpush3.bf16.msra.mxu1 %v2067_v52 }
  0x29   : > { %2070 = vmatprep.subr.bf16.mxu1 %v2069_v53 }
  0x2c   : > { %2072 = vmatpush3.bf16.msra.mxu1 %v2071_v56 }
  0x2d   : > { %2074 = vmatprep.subr.bf16.mxu1 %v2073_v59  ;;  %v640_v59 = vand.u32 127, %v639_v58  ;;  %v838_v58 = vld [vmem:[%s3173_s7 + $0xe8] sm:$0xff] }
  0x2f   : > { %v2605_v60 = vcvt.s32.f32 %v640_v59 }
  0x30   : > { %2076 = vmatpush3.bf16.msra.mxu1 %v2075_v62 }
  0xec   : > { %v470_v1 = vpop.f32.mrb[0].mxu0 }
  0xed   : > { %v472_v2 = vpop.f32.mrb[1].mxu0  ;;  %v481_v4 = vmul.f32 %v470_v1, %v2575_v0 }
  0xee   : > { %v482_v3 = vmul.f32 %v472_v2, %v2573_v63 }
  0xf0   : > { %v476_v8 = vpop.f32.mrb[2].mxu0  ;;  %581 = vmatprep.mubr.f32.mxu1 %v482_v3 }
  0xf1   : > { %v478_v9 = vpop.f32.mrb[3].mxu0  ;;  %582 = vmatmul.mubr.f32.vlgmr.msra.gmra.mrb[0].mxu1 %v481_v4  ;;  %v483_v11 = vmul.f32 %v476_v8, %v2581_v6  ;;  %v2616_v8 = vld [vmem:[%s3172_s6 + $0x8] sm:$0xff] }
  0xf2   : > { %v484_v10 = vmul.f32 %v478_v9, %v2579_v5  ;;  %728 = vmatprep.subr.mxu0 %v2616_v8  ;;  %v2622_v9 = vld [vmem:[%s3172_s6] sm:$0xff]  ;;  %997 = vmatprep.subr.mxu1 %v2616_v8 }
  0xf3   : > { %729 = vmatpush1.msra.mxu0 %v2622_v9  ;;  %998 = vmatpush1.msra.mxu1 %v2622_v9 }
  0xf4   : > { %586 = vmatprep.mubr.f32.mxu1 %v484_v10 }
  0xf5   : > { %587 = vmatmul.mubr.f32.gmra.mrb[2].mxu1 %v483_v11 }
  0xf6   : > { %1061 = vmatprep.mubr.f32.mxu1 %v2327_v7 }
 0x1c4   : > { %v1862_v12 = vpop.f32.mrb[0].mxu1 }
 0x1c5   : > { %v1863_v14 = vpop.f32.mrb[1].mxu1 }
 0x1c6   : > { %v1864_v15 = vadd.f32 %v1863_v14, %v1862_v12 }
 0x1c8   : > { %v592_v16 = vmul.f32 0.17677669, %v1864_v15  ;;  %v1865_v17 = vpop.f32.mrb[2].mxu1 }
 0x1c9   : > { %v1866_v19 = vpop.f32.mrb[3].mxu1 }
 0x1ca   : > { %v1867_v20 = vadd.f32 %v1866_v19, %v1865_v17  ;;  %v596_v21 = vsel %vm594_vm1, -1e+38, %v592_v16  ;;  %v826_v19 = vld [vmem:[%s3173_s7 + $0x88] sm:$0xff] }
 0x1cb   : > { %v599_v22 = vsel %vm598_vm2, %v596_v21, -inf }
 0x1cc   : > { %v593_v23 = vmul.f32 0.17677669, %v1867_v20  ;;  %600 = vmax.xlane.f32.xlu0 %v599_v22  ;;  %v809_v20 = vld [vmem:[%s3173_s7] sm:$0xff]  ;;  %v810_v22 = vld [vmem:[%s3173_s7 + $0x8] sm:$0xff] }
 0x1ce   : > { %v597_v24 = vsel %vm595_vm3, -1e+38, %v593_v23  ;;  %v827_v23 = vld [vmem:[%s3173_s7 + $0x90] sm:$0xff] }
 0x1cf   : > { %v602_v25 = vsel %vm598_vm2, %v597_v24, -inf }
 0x1d0   : > { %603 = vmax.xlane.f32.xlu0 %v602_v25  ;;  %v2079_v25 = vpack.c.bf16 %v810_v22, %v809_v20 }
 0x259   : > { %v601_v26 = vpop.xlane.xlu0 %600 }
 0x25a   : > { %v605_v28 = vmax.f32 %v601_v26, -1e+30 }
 0x25c   : > { %v607_v29 = vsub.f32 %v596_v21, %v605_v28  ;;  %v2077_v21 = vpack.c.bf16 %v826_v19, %v825_v18  ;;  %v811_v28 = vld [vmem:[%s3173_s7 + $0x10] sm:$0xff] }
 0x25d   : > { %v604_v30 = vpop.xlane.xlu0 %603 }
 0x25e   : > { %v609_v31 = vmul.f32 1.442695, %v607_v29  ;;  %v606_v32 = vmax.f32 %v604_v30, -1e+30  ;;  %v812_v29 = vld [vmem:[%s3173_s7 + $0x18] sm:$0xff]  ;;  %v829_v30 = vld [vmem:[%s3173_s7 + $0xa0] sm:$0xff]  ;;  %2078 = vmatprep.subr.bf16.mxu0 %v2077_v21 }
 0x260   : > { %2255 = vpow2.f32 %v609_v31  ;;  %v608_v33 = vsub.f32 %v597_v24, %v606_v32  ;;  %v828_v24 = vld [vmem:[%s3173_s7 + $0x98] sm:$0xff]  ;;  %v830_v31 = vld [vmem:[%s3173_s7 + $0xa8] sm:$0xff]  ;;  %v2083_v32 = vpack.c.bf16 %v812_v29, %v811_v28 }
 0x261   : > { %v2081_v26 = vpack.c.bf16 %v828_v24, %v827_v23  ;;  %v719_v28 = vld [vmem:[%s3170_s4 + $0x18] sm:$0xff] }
 0x262   : > { %v611_v35 = vmul.f32 1.442695, %v608_v33  ;;  %v2085_v33 = vpack.c.bf16 %v830_v31, %v829_v30 }
 0x264   : > { %2257 = vpow2.f32 %v611_v35  ;;  %v813_v35 = vld [vmem:[%s3173_s7 + $0x20] sm:$0xff] }
 0x26a   : > { %v2256_v36 = vpop.eup %2255 }
 0x26b   : > { %v613_v37 = vsel %vm598_vm2, %v2256_v36, 0.0 }
 0x26c   : > { %614 = vadd.xlane.f32.xlu1 %v613_v37  ;;  %v831_v37 = vld [vmem:[%s3173_s7 + $0xb0] sm:$0xff] }
 0x26e   : > { %v2258_v38 = vpop.eup %2257 }
 0x26f   : > { %v616_v39 = vsel %vm598_vm2, %v2258_v38, 0.0 }
 0x270   : > { %617 = vadd.xlane.f32.xlu1 %v616_v39 }
 0x2f9   : > { %v615_v40 = vpop.xlane.xlu1 %614 }
 0x2fa   : > { %vm619_vm4 = vcmp.gt.f32.partialorder %v615_v40, 0.0 }
 0x2fb   : > { %v621_v41 = vsel %vm619_vm4, %v615_v40, 1.0 }
 0x2fc   : > { %2259 = vrcp.f32 %v621_v41 }
 0x2fd   : > { %v618_v42 = vpop.xlane.xlu1 %617 }
 0x2fe   : > { %vm620_vm5 = vcmp.gt.f32.partialorder %v618_v42, 0.0 }
 0x2ff   : > { %v622_v43 = vsel %vm620_vm5, %v618_v42, 1.0  ;;  %v816_v42 = vld [vmem:[%s3173_s7 + $0x38] sm:$0xff] }
 0x300   : > { %2261 = vrcp.f32 %v622_v43 }
 0x306   : > { %v2260_v44 = vpop.eup %2259 }
 0x307   : > { %v625_v45 = vmul.f32 %v2260_v44, %v621_v41  ;;  %v815_v41 = vld [vmem:[%s3173_s7 + $0x30] sm:$0xff] }
 0x309   : > { %v627_v46 = vsub.f32 2.0, %v625_v45  ;;  %v2091_v45 = vpack.c.bf16 %v816_v42, %v815_v41 }
 0x30a   : > { %v2262_v47 = vpop.eup %2261 }
 0x30b   : > { %v629_v48 = vmul.f32 %v2260_v44, %v627_v46  ;;  %v626_v49 = vmul.f32 %v2262_v47, %v622_v43  ;;  %v833_v43 = vld [vmem:[%s3173_s7 + $0xc0] sm:$0xff]  ;;  %v834_v44 = vld [vmem:[%s3173_s7 + $0xc8] sm:$0xff] }
 0x30c   : > { %v2093_v46 = vpack.c.bf16 %v834_v44, %v833_v43  ;;  %v1739_v44 = vld [vmem:[%s3173_s7 + $0x188] sm:$0xff] }
 0x30d   : > { %v631_v50 = vmul.f32 %v2256_v36, %v629_v48  ;;  %v628_v51 = vsub.f32 2.0, %v626_v49  ;;  %v814_v36 = vld [vmem:[%s3173_s7 + $0x28] sm:$0xff]  ;;  %v835_v49 = vld [vmem:[%s3173_s7 + $0xd0] sm:$0xff] }
 0x30e   : > { %v2087_v39 = vpack.c.bf16 %v814_v36, %v813_v35  ;;  %v818_v48 = vld [vmem:[%s3173_s7 + $0x48] sm:$0xff] }
 0x30f   : > { %v2596_v52 = vsel %vm619_vm4, %v631_v50, 0.0  ;;  %v630_v53 = vmul.f32 %v2262_v47, %v628_v51  ;;  %v817_v47 = vld [vmem:[%s3173_s7 + $0x40] sm:$0xff]  ;;  %v836_v50 = vld [vmem:[%s3173_s7 + $0xd8] sm:$0xff] }
 0x310   : > { %v642_v54 = vsel %vm598_vm2, %v2596_v52, -inf  ;;  %v2095_v51 = vpack.c.bf16 %v818_v48, %v817_v47  ;;  %v1740_v47 = vld [vmem:[%s3173_s7 + $0x190] sm:$0xff]  ;;  %v1741_v48 = vld [vmem:[%s3173_s7 + $0x198] sm:$0xff] }
 0x311   : > { %v632_v55 = vmul.f32 %v2258_v38, %v630_v53  ;;  %643 = vmax.xlane.f32.xlu0 %v642_v54  ;;  %v832_v38 = vld [vmem:[%s3173_s7 + $0xb8] sm:$0xff]  ;;  %v2097_v53 = vpack.c.bf16 %v836_v50, %v835_v49  ;;  %v819_v54 = vld [vmem:[%s3173_s7 + $0x50] sm:$0xff]  ;;  %v2121_v50 = vpack.c.bf16 %v1741_v48, %v1740_v47 }
 0x312   : > { %v2089_v40 = vpack.c.bf16 %v832_v38, %v831_v37 }
 0x313   : > { %v2601_v56 = vsel %vm620_vm5, %v632_v55, 0.0  ;;  %v820_v55 = vld [vmem:[%s3173_s7 + $0x58] sm:$0xff] }
 0x314   : > { %v645_v57 = vsel %vm598_vm2, %v2601_v56, -inf  ;;  %v2099_v59 = vpack.c.bf16 %v820_v55, %v819_v54  ;;  %v1742_v54 = vld [vmem:[%s3173_s7 + $0x1a0] sm:$0xff]  ;;  %v1743_v55 = vld [vmem:[%s3173_s7 + $0x1a8] sm:$0xff] }
 0x315   : > { %646 = vmax.xlane.f32.xlu1 %v645_v57  ;;  %v837_v57 = vld [vmem:[%s3173_s7 + $0xe0] sm:$0xff] }
 0x39e   : > { %v644_v61 = vpop.xlane.xlu0 %643 }
 0x39f   : > { %vm648_vm6 = vcmp.eq.f32.partialorder %v2596_v52, %v644_v61  ;;  %v2101_v61 = vpack.c.bf16 %v838_v58, %v837_v57  ;;  %v2125_v58 = vpack.c.bf16 %v1743_v55, %v1742_v54 }
 0x3a0   : > { %v650_v62 = vsel %vm648_vm6, %v2605_v60, 8.0 }
 0x3a1   : > { %v652_v1 = vsel %vm598_vm2, %v650_v62, inf  ;;  %v821_v62 = vld [vmem:[%s3173_s7 + $0x60] sm:$0xff] }
 0x3a2   : > { %v647_v2 = vpop.xlane.xlu1 %646  ;;  %653 = vmin.xlane.f32.xlu0 %v652_v1  ;;  %v822_v1 = vld [vmem:[%s3173_s7 + $0x68] sm:$0xff] }
 0x3a3   : > { %vm649_vm7 = vcmp.eq.f32.partialorder %v2601_v56, %v647_v2  ;;  %v2103_v2 = vpack.c.bf16 %v822_v1, %v821_v62  ;;  %v1744_v62 = vld [vmem:[%s3173_s7 + $0x1b0] sm:$0xff]  ;;  %v1745_v1 = vld [vmem:[%s3173_s7 + $0x1b8] sm:$0xff] }
 0x3a4   : > { %v651_v3 = vsel %vm649_vm7, %v2605_v60, 8.0 }
 0x3a5   : > { %v655_v4 = vsel %vm598_vm2, %v651_v3, inf  ;;  %v839_v3 = vld [vmem:[%s3173_s7 + $0xf0] sm:$0xff] }
 0x3a6   : > { %656 = vmin.xlane.f32.xlu1 %v655_v4  ;;  %v840_v4 = vld [vmem:[%s3173_s7 + $0xf8] sm:$0xff] }
 0x42f   : > { %v654_v10 = vpop.xlane.xlu0 %653 }
 0x430   : > { %vm658_vm8 = vcmp.eq.f32.partialorder %v2605_v60, %v654_v10  ;;  %v2105_v10 = vpack.c.bf16 %v840_v4, %v839_v3  ;;  %v2129_v3 = vpack.c.bf16 %v1745_v1, %v1744_v62  ;;  %v1728_v4 = vld [vmem:[%s3173_s7 + $0x130] sm:$0xff] }
 0x431   : > { %v1710_v11 = vsel %vm658_vm8, 1.0, %v2327_v7 }
 0x432   : > { %vm664_vm9 = vcmp.gt.f32.partialorder %v1710_v11, 0.5  ;;  %1716 = vmatmul.mubr.msk.f32.vlgmr.msra.gmra.mrb[4].mxu0 %vm598_vm2, %v1710_v11  ;;  %v823_v11 = vld [vmem:[%s3173_s7 + $0x70] sm:$0xff] }
 0x433   : > { %v657_v12 = vpop.xlane.xlu1 %656  ;;  %798 = vmatprep.mubr.f32.mxu0 %v2327_v7  ;;  %v2632_v13 = vsel %vm664_vm9, -1e+38, %v2596_v52  ;;  %2080 = vmatpush3.bf16.msra.mxu0 %v2079_v25 }
 0x434   : > { %vm659_vm10 = vcmp.eq.f32.partialorder %v2605_v60, %v657_v12  ;;  %v668_v14 = vsel %vm598_vm2, %v2632_v13, -inf  ;;  %2082 = vmatprep.subr.bf16.mxu0 %v2081_v26  ;;  %v824_v12 = vld [vmem:[%s3173_s7 + $0x78] sm:$0xff]  ;;  %v718_v26 = vld [vmem:[%s3170_s4 + $0x10] sm:$0xff] }
 0x435   : > { %v1711_v15 = vsel %vm659_vm10, 1.0, %v2327_v7  ;;  %669 = vmax.xlane.f32.xlu0 %v668_v14  ;;  %v2107_v14 = vpack.c.bf16 %v824_v12, %v823_v11  ;;  %v1746_v11 = vld [vmem:[%s3173_s7 + $0x1c0] sm:$0xff]  ;;  %v1747_v12 = vld [vmem:[%s3173_s7 + $0x1c8] sm:$0xff] }
 0x436   : > { %vm665_vm11 = vcmp.gt.f32.partialorder %v1711_v15, 0.5  ;;  %1717 = vmatmul.mubr.msk.f32.gmra.mrb[6].mxu0 %vm598_vm2, %v1711_v15  ;;  %v716_v15 = vld [vmem:[%s3170_s4] sm:$0xff] }
 0x437   : > { %v2640_v16 = vsel %vm665_vm11, -1e+38, %v2601_v56  ;;  %2084 = vmatpush3.bf16.msra.mxu0 %v2083_v32  ;;  %v2113_v32 = vpack.c.bf16 %v719_v28, %v718_v26  ;;  %v1751_v26 = vld [vmem:[%s3173_s7 + $0x1e8] sm:$0xff] }
 0x438   : > { %v671_v17 = vsel %vm598_vm2, %v2640_v16, -inf  ;;  %2086 = vmatprep.subr.bf16.mxu0 %v2085_v33 }
 0x439   : > { %672 = vmax.xlane.f32.xlu1 %v671_v17  ;;  %v717_v17 = vld [vmem:[%s3170_s4 + $0x8] sm:$0xff] }
 0x43a   : > { %v2109_v18 = vpack.c.bf16 %v717_v17, %v716_v15  ;;  %v2133_v15 = vpack.c.bf16 %v1747_v12, %v1746_v11  ;;  %v1730_v17 = vld [vmem:[%s3173_s7 + $0x140] sm:$0xff]  ;;  %v1773_v11 = vld [vmem:[%s3173_s7 + $0x288] sm:$0xff] }
 0x43b   : > { %2088 = vmatpush3.bf16.msra.mxu0 %v2087_v39  ;;  %v1756_v12 = vld [vmem:[%s3173_s7 + $0x200] sm:$0xff] }
 0x43c   : > { %2090 = vmatprep.subr.bf16.mxu0 %v2089_v40 }
 0x43f   : > { %2092 = vmatpush3.bf16.msra.mxu0 %v2091_v45  ;;  %v1722_v45 = vld [vmem:[%s3173_s7 + $0x100] sm:$0xff] }
 0x440   : > { %2094 = vmatprep.subr.bf16.mxu0 %v2093_v46 }
 0x443   : > { %2096 = vmatpush3.bf16.msra.mxu0 %v2095_v51  ;;  %v1724_v51 = vld [vmem:[%s3173_s7 + $0x110] sm:$0xff] }
 0x444   : > { %2098 = vmatprep.subr.bf16.mxu0 %v2097_v53  ;;  %v1725_v53 = vld [vmem:[%s3173_s7 + $0x118] sm:$0xff] }
 0x445   : > { %v2123_v57 = vpack.c.bf16 %v1725_v53, %v1724_v51 }
 0x447   : > { %2100 = vmatpush3.bf16.msra.mxu0 %v2099_v59  ;;  %v1726_v59 = vld [vmem:[%s3173_s7 + $0x120] sm:$0xff] }
 0x448   : > { %2102 = vmatprep.subr.bf16.mxu0 %v2101_v61  ;;  %v1727_v61 = vld [vmem:[%s3173_s7 + $0x128] sm:$0xff] }
 0x44b   : > { %2104 = vmatpush3.bf16.msra.mxu0 %v2103_v2  ;;  %v2127_v2 = vpack.c.bf16 %v1727_v61, %v1726_v59 }
 0x44c   : > { %2106 = vmatprep.subr.bf16.mxu0 %v2105_v10  ;;  %v1729_v10 = vld [vmem:[%s3173_s7 + $0x138] sm:$0xff] }
 0x44f   : > { %2108 = vmatpush3.bf16.msra.mxu0 %v2107_v14  ;;  %v2131_v14 = vpack.c.bf16 %v1729_v10, %v1728_v4  ;;  %v1772_v10 = vld [vmem:[%s3173_s7 + $0x280] sm:$0xff] }
 0x450   : > { %2110 = vmatprep.subr.bf16.mxu0 %v2109_v18 }
 0x4c2   : > { %v670_v19 = vpop.xlane.xlu0 %669 }
 0x4c3   : > { %vm674_vm12 = vcmp.eq.f32.partialorder %v2632_v13, %v670_v19  ;;  %v1748_v19 = vld [vmem:[%s3173_s7 + $0x1d0] sm:$0xff] }
 0x4c4   : > { %v676_v20 = vsel %vm674_vm12, %v2605_v60, 8.0 }
 0x4c5   : > { %v678_v21 = vsel %vm598_vm2, %v676_v20, inf  ;;  %v1749_v20 = vld [vmem:[%s3173_s7 + $0x1d8] sm:$0xff] }
 0x4c6   : > { %v673_v22 = vpop.xlane.xlu1 %672  ;;  %679 = vmin.xlane.f32.xlu0 %v678_v21 }
 0x4c7   : > { %vm675_vm13 = vcmp.eq.f32.partialorder %v2640_v16, %v673_v22  ;;  %v2137_v22 = vpack.c.bf16 %v1749_v20, %v1748_v19  ;;  %v1758_v20 = vld [vmem:[%s3173_s7 + $0x210] sm:$0xff] }
 0x4c8   : > { %v677_v23 = vsel %vm675_vm13, %v2605_v60, 8.0 }
 0x4c9   : > { %v681_v24 = vsel %vm598_vm2, %v677_v23, inf  ;;  %v1732_v23 = vld [vmem:[%s3173_s7 + $0x150] sm:$0xff] }
 0x4ca   : > { %682 = vmin.xlane.f32.xlu1 %v681_v24  ;;  %v1733_v24 = vld [vmem:[%s3173_s7 + $0x158] sm:$0xff] }
 0x4cb   : > { %v2139_v28 = vpack.c.bf16 %v1733_v24, %v1732_v23  ;;  %v1777_v23 = vld [vmem:[%s3173_s7 + $0x2a8] sm:$0xff] }
 0x505   : > { %v794_v25 = vpop.f32.mrb[4].mxu0 }
 0x506   : > { %v796_v29 = vpop.f32.mrb[5].mxu0  ;;  %v805_v31 = vmul.f32 %v794_v25, %v2575_v0  ;;  %v1750_v25 = vld [vmem:[%s3173_s7 + $0x1e0] sm:$0xff] }
 0x507   : > { %v806_v30 = vmul.f32 %v796_v29, %v2573_v63  ;;  %v2141_v29 = vpack.c.bf16 %v1751_v26, %v1750_v25  ;;  %v1760_v26 = vld [vmem:[%s3173_s7 + $0x220] sm:$0xff] }
 0x509   : > { %v800_v33 = vpop.f32.mrb[6].mxu0  ;;  %905 = vmatprep.mubr.f32.mxu0 %v806_v30  ;;  %v1734_v30 = vld [vmem:[%s3173_s7 + $0x160] sm:$0xff] }
 0x50a   : > { %v802_v35 = vpop.f32.mrb[7].mxu0  ;;  %906 = vmatmul.mubr.f32.vlgmr.msra.gmra.mrb[8].mxu0 %v805_v31  ;;  %v807_v37 = vmul.f32 %v800_v33, %v2581_v6  ;;  %v1735_v31 = vld [vmem:[%s3173_s7 + $0x168] sm:$0xff]  ;;  %v1752_v33 = vld [vmem:[%s3173_s7 + $0x1f0] sm:$0xff] }
 0x50b   : > { %v808_v36 = vmul.f32 %v802_v35, %v2579_v5  ;;  %2112 = vmatpush3.bf16.msra.mxu0 %v2109_v18  ;;  %v1731_v18 = vld [vmem:[%s3173_s7 + $0x148] sm:$0xff]  ;;  %v1753_v35 = vld [vmem:[%s3173_s7 + $0x1f8] sm:$0xff] }
 0x50c   : > { %2114 = vmatprep.subr.bf16.mxu0 %v2113_v32  ;;  %v2135_v21 = vpack.c.bf16 %v1731_v18, %v1730_v17  ;;  %v1775_v17 = vld [vmem:[%s3173_s7 + $0x298] sm:$0xff] }
 0x50d   : > { %910 = vmatprep.mubr.f32.mxu0 %v808_v36  ;;  %v2145_v36 = vpack.c.bf16 %v1753_v35, %v1752_v33  ;;  %v1762_v33 = vld [vmem:[%s3173_s7 + $0x230] sm:$0xff]  ;;  %v1763_v35 = vld [vmem:[%s3173_s7 + $0x238] sm:$0xff] }
 0x50e   : > { %911 = vmatmul.mubr.f32.gmra.mrb[10].mxu0 %v807_v37  ;;  %v1736_v37 = vld [vmem:[%s3173_s7 + $0x170] sm:$0xff] }
 0x50f   : > { %2116 = vmatpush3.bf16.msra.mxu0 %v2113_v32  ;;  %2034 = vmatprep.mubr.msk.f32.mxu0 %vm397_vm0, %v2493_v27  ;;  %v2143_v32 = vpack.c.bf16 %v1735_v31, %v1734_v30  ;;  %v1779_v30 = vld [vmem:[%s3173_s7 + $0x2b8] sm:$0xff] }
 0x510   : > { %1194 = vmatprep.subr.mxu0 %v2616_v8 }
 0x512   : > { %2035 = vmatmul.mubr.msk.f32.vlgmr.msra.gmra.mrb[12].mxu0 %vm397_vm0, %v2510_v34 }
 0x513   : > { %1195 = vmatpush1.msra.mxu0 %v2622_v9  ;;  %1258 = vmatprep.mubr.f32.mxu0 %v2327_v7 }
 0x553   : > { %v680_v38 = vpop.xlane.xlu0 %679 }
 0x554   : > { %vm684_vm14 = vcmp.eq.f32.partialorder %v2605_v60, %v680_v38  ;;  %v1737_v38 = vld [vmem:[%s3173_s7 + $0x178] sm:$0xff] }
 0x555   : > { %v1712_v39 = vsel %vm684_vm14, 1.0, %v2327_v7 }
 0x556   : > { %1720 = vmatmul.mubr.msk.f32.vlgmr.msra.gmra.mrb[4].mxu1 %vm598_vm2, %v1712_v39  ;;  %vm690_vm15 = vcmp.gt.f32.partialorder %v1712_v39, 0.5  ;;  %v2147_v39 = vpack.c.bf16 %v1737_v38, %v1736_v37  ;;  %v1781_v37 = vld [vmem:[%s3173_s7 + $0x2c8] sm:$0xff]  ;;  %v2163_v38 = vpack.c.bf16 %v1763_v35, %v1762_v33  ;;  %v1798_v33 = vld [vmem:[%s3173_s7 + $0x340] sm:$0xff] }
 0x557   : > { %v683_v40 = vpop.xlane.xlu1 %682  ;;  %1067 = vmatprep.mubr.f32.mxu1 %v2327_v7  ;;  %v2774_v27 = vsel %vm690_vm15, -1e+38, %v2632_v13  ;;  %v1738_v13 = vld [vmem:[%s3173_s7 + $0x180] sm:$0xff]  ;;  %v1799_v35 = vld [vmem:[%s3173_s7 + $0x348] sm:$0xff] }
 0x558   : > { %vm685_vm0 = vcmp.eq.f32.partialorder %v2605_v60, %v683_v40  ;;  %v694_v34 = vsel %vm598_vm2, %v2774_v27, -inf  ;;  %v2117_v46 = vpack.c.bf16 %v1739_v44, %v1738_v13 }
 0x559   : > { %v1713_v41 = vsel %vm685_vm0, 1.0, %v2327_v7  ;;  %695 = vmax.xlane.f32.xlu0 %v694_v34 }
 0x55a   : > { %1721 = vmatmul.mubr.msk.f32.gmra.mrb[6].mxu1 %vm598_vm2, %v1713_v41  ;;  %vm691_vm1 = vcmp.gt.f32.partialorder %v1713_v41, 0.5  ;;  %2118 = vmatprep.subr.bf16.mxu1 %v2117_v46 }
 0x55b   : > { %v2782_v42 = vsel %vm691_vm1, -1e+38, %v2640_v16  ;;  %v1723_v16 = vld [vmem:[%s3173_s7 + $0x108] sm:$0xff] }
 0x55c   : > { %v697_v43 = vsel %vm598_vm2, %v2782_v42, -inf  ;;  %v2119_v49 = vpack.c.bf16 %v1723_v16, %v1722_v45 }
 0x55d   : > { %698 = vmax.xlane.f32.xlu1 %v697_v43 }
 0x55e   : > { %2120 = vmatpush3.bf16.msra.mxu1 %v2119_v49 }
 0x55f   : > { %2122 = vmatprep.subr.bf16.mxu1 %v2121_v50 }
 0x562   : > { %2124 = vmatpush3.bf16.msra.mxu1 %v2123_v57 }
 0x563   : > { %2126 = vmatprep.subr.bf16.mxu1 %v2125_v58 }
 0x566   : > { %2128 = vmatpush3.bf16.msra.mxu1 %v2127_v2 }
 0x567   : > { %2130 = vmatprep.subr.bf16.mxu1 %v2129_v3 }
 0x56a   : > { %2132 = vmatpush3.bf16.msra.mxu1 %v2131_v14  ;;  %v2149_v14 = vpack.c.bf16 %v1773_v11, %v1772_v10  ;;  %v1809_v10 = vld [vmem:[%s3173_s7 + $0x398] sm:$0xff] }
 0x56b   : > { %2134 = vmatprep.subr.bf16.mxu1 %v2133_v15  ;;  %v1774_v15 = vld [vmem:[%s3173_s7 + $0x290] sm:$0xff] }
 0x56c   : > { %v2153_v19 = vpack.c.bf16 %v1775_v17, %v1774_v15  ;;  %2150 = vmatprep.subr.bf16.mxu0 %v2149_v14  ;;  %v1792_v14 = vld [vmem:[%s3173_s7 + $0x310] sm:$0xff]  ;;  %v1810_v15 = vld [vmem:[%s3173_s7 + $0x3a0] sm:$0xff]  ;;  %v1811_v17 = vld [vmem:[%s3173_s7 + $0x3a8] sm:$0xff] }
 0x56e   : > { %2136 = vmatpush3.bf16.msra.mxu1 %v2135_v21  ;;  %v1759_v21 = vld [vmem:[%s3173_s7 + $0x218] sm:$0xff] }
 0x56f   : > { %2138 = vmatprep.subr.bf16.mxu1 %v2137_v22  ;;  %v1776_v22 = vld [vmem:[%s3173_s7 + $0x2a0] sm:$0xff]  ;;  %v2155_v24 = vpack.c.bf16 %v1759_v21, %v1758_v20  ;;  %v1795_v21 = vld [vmem:[%s3173_s7 + $0x328] sm:$0xff] }
 0x570   : > { %v2157_v25 = vpack.c.bf16 %v1777_v23, %v1776_v22  ;;  %v1794_v20 = vld [vmem:[%s3173_s7 + $0x320] sm:$0xff]  ;;  %v1812_v22 = vld [vmem:[%s3173_s7 + $0x3b0] sm:$0xff]  ;;  %v1813_v23 = vld [vmem:[%s3173_s7 + $0x3b8] sm:$0xff] }
 0x572   : > { %2140 = vmatpush3.bf16.msra.mxu1 %v2139_v28  ;;  %v1761_v28 = vld [vmem:[%s3173_s7 + $0x228] sm:$0xff] }
 0x573   : > { %2142 = vmatprep.subr.bf16.mxu1 %v2141_v29  ;;  %v1778_v29 = vld [vmem:[%s3173_s7 + $0x2b0] sm:$0xff]  ;;  %v2159_v31 = vpack.c.bf16 %v1761_v28, %v1760_v26  ;;  %v1797_v28 = vld [vmem:[%s3173_s7 + $0x338] sm:$0xff] }
 0x574   : > { %v1796_v26 = vld [vmem:[%s3173_s7 + $0x330] sm:$0xff] }
 0x576   : > { %2144 = vmatpush3.bf16.msra.mxu1 %v2143_v32  ;;  %v2161_v32 = vpack.c.bf16 %v1779_v30, %v1778_v29  ;;  %v1814_v29 = vld [vmem:[%s3173_s7 + $0x3c0] sm:$0xff]  ;;  %v1815_v30 = vld [vmem:[%s3173_s7 + $0x3c8] sm:$0xff] }
 0x577   : > { %2146 = vmatprep.subr.bf16.mxu1 %v2145_v36  ;;  %v1780_v36 = vld [vmem:[%s3173_s7 + $0x2c0] sm:$0xff] }
 0x57a   : > { %2148 = vmatpush3.bf16.msra.mxu1 %v2147_v39  ;;  %v2165_v39 = vpack.c.bf16 %v1781_v37, %v1780_v36  ;;  %v2199_v36 = vpack.c.bf16 %v1799_v35, %v1798_v33 }
 0x5dd   : > { %v1900_v40 = vpop.f32.mrb[8].mxu0 }
 0x5de   : > { %v1901_v34 = vpop.f32.mrb[9].mxu0 }
 0x5df   : > { %v1902_v41 = vadd.f32 %v1901_v34, %v1900_v40  ;;  %v1764_v40 = vld [vmem:[%s3173_s7 + $0x240] sm:$0xff]  ;;  %v1765_v34 = vld [vmem:[%s3173_s7 + $0x248] sm:$0xff] }
 0x5e1   : > { %v1903_v43 = vpop.f32.mrb[10].mxu0 }
 0x5e2   : > { %v1904_v13 = vpop.f32.mrb[11].mxu0 }
 0x5e3   : > { %v1905_v44 = vadd.f32 %v1904_v13, %v1903_v43  ;;  %v1783_v43 = vld [vmem:[%s3173_s7 + $0x2d8] sm:$0xff]  ;;  %v2167_v13 = vpack.c.bf16 %v1765_v34, %v1764_v40 }
 0x5e5   : > { %v2036_v45 = vpop.f32.mrb[12].mxu0 }
 0x5e6   : > { %v2882_v46 = vadd.f32 %v2036_v45, %v1905_v44  ;;  %v982_v16 = vpop.f32.mrb[13].mxu0  ;;  %v696_v47 = vpop.xlane.xlu0 %695  ;;  %v1766_v45 = vld [vmem:[%s3173_s7 + $0x250] sm:$0xff] }
 0x5e7   : > { %v2884_v48 = vadd.f32 %v1902_v41, %v982_v16  ;;  %vm700_vm3 = vcmp.eq.f32.partialorder %v2774_v27, %v696_v47  ;;  %v1782_v41 = vld [vmem:[%s3173_s7 + $0x2d0] sm:$0xff]  ;;  %v1767_v16 = vld [vmem:[%s3173_s7 + $0x258] sm:$0xff]  ;;  %v1784_v47 = vld [vmem:[%s3173_s7 + $0x2e0] sm:$0xff] }
 0x5e8   : > { %v702_v49 = vsel %vm700_vm3, %v2605_v60, 8.0  ;;  %v2169_v44 = vpack.c.bf16 %v1783_v43, %v1782_v41 }
 0x5e9   : > { %v704_v50 = vsel %vm598_vm2, %v702_v49, inf  ;;  %v1785_v49 = vld [vmem:[%s3173_s7 + $0x2e8] sm:$0xff] }
 0x5ea   : > { %v699_v51 = vpop.xlane.xlu1 %698  ;;  %705 = vmin.xlane.f32.xlu0 %v704_v50  ;;  %v2171_v50 = vpack.c.bf16 %v1767_v16, %v1766_v45 }
 0x5eb   : > { %vm701_vm4 = vcmp.eq.f32.partialorder %v2782_v42, %v699_v51  ;;  %v2173_v51 = vpack.c.bf16 %v1785_v49, %v1784_v47 }
 0x5ec   : > { %v703_v53 = vsel %vm701_vm4, %v2605_v60, 8.0 }
 0x5ed   : > { %v707_v54 = vsel %vm598_vm2, %v703_v53, inf  ;;  %v1768_v53 = vld [vmem:[%s3173_s7 + $0x260] sm:$0xff] }
 0x5ee   : > { %708 = vmin.xlane.f32.xlu1 %v707_v54  ;;  %v1769_v54 = vld [vmem:[%s3173_s7 + $0x268] sm:$0xff] }
 0x629   : > { %v1063_v55 = vpop.f32.mrb[4].mxu1 }
 0x62a   : > { %v1065_v57 = vpop.f32.mrb[5].mxu1  ;;  %v1074_v59 = vmul.f32 %v1063_v55, %v2575_v0  ;;  %v2175_v55 = vpack.c.bf16 %v1769_v54, %v1768_v53  ;;  %v1800_v54 = vld [vmem:[%s3173_s7 + $0x350] sm:$0xff] }
 0x62b   : > { %v1075_v58 = vmul.f32 %v1065_v57, %v2573_v63  ;;  %v1786_v57 = vld [vmem:[%s3173_s7 + $0x2f0] sm:$0xff] }
 0x62d   : > { %v1069_v27 = vpop.f32.mrb[6].mxu1  ;;  %1175 = vmatprep.mubr.f32.mxu1 %v1075_v58  ;;  %v1787_v58 = vld [vmem:[%s3173_s7 + $0x2f8] sm:$0xff] }
 0x62e   : > { %v1071_v61 = vpop.f32.mrb[7].mxu1  ;;  %1176 = vmatmul.mubr.f32.vlgmr.msra.gmra.mrb[8].mxu1 %v1074_v59  ;;  %v1076_v1 = vmul.f32 %v1069_v27, %v2581_v6  ;;  %v2177_v59 = vpack.c.bf16 %v1787_v58, %v1786_v57  ;;  %v1770_v27 = vld [vmem:[%s3173_s7 + $0x270] sm:$0xff]  ;;  %v1802_v58 = vld [vmem:[%s3173_s7 + $0x360] sm:$0xff] }
 0x62f   : > { %v1077_v62 = vmul.f32 %v1071_v61, %v2579_v5  ;;  %v1771_v61 = vld [vmem:[%s3173_s7 + $0x278] sm:$0xff] }
 0x631   : > { %1180 = vmatprep.mubr.f32.mxu1 %v1077_v62  ;;  %v2179_v62 = vpack.c.bf16 %v1771_v61, %v1770_v27  ;;  %v1820_v61 = vld [vmem:[%s3173_s7 + $0x3f0] sm:$0xff] }
 0x632   : > { %1181 = vmatmul.mubr.f32.gmra.mrb[10].mxu1 %v1076_v1  ;;  %v1806_v1 = vld [vmem:[%s3173_s7 + $0x380] sm:$0xff] }
 0x677   : > { %v706_v42 = vpop.xlane.xlu0 %705 }
 0x678   : > { %vm710_vm5 = vcmp.eq.f32.partialorder %v2605_v60, %v706_v42  ;;  %v1807_v42 = vld [vmem:[%s3173_s7 + $0x388] sm:$0xff] }
 0x679   : > { %v1714_v2 = vsel %vm710_vm5, 1.0, %v2327_v7 }
 0x67a   : > { %1754 = vmatmul.mubr.msk.f32.vlgmr.msra.gmra.mrb[14].mxu0 %vm598_vm2, %v1714_v2  ;;  %v1790_v2 = vld [vmem:[%s3173_s7 + $0x300] sm:$0xff] }
 0x67b   : > { %v709_v3 = vpop.xlane.xlu1 %708  ;;  %1264 = vmatprep.mubr.f32.mxu0 %v2327_v7 }
 0x67c   : > { %vm711_vm6 = vcmp.eq.f32.partialorder %v2605_v60, %v709_v3  ;;  %v1757_v60 = vld [vmem:[%s3173_s7 + $0x208] sm:$0xff]  ;;  %v2181_v3 = vpack.c.bf16 %v1807_v42, %v1806_v1  ;;  %v1804_v42 = vld [vmem:[%s3173_s7 + $0x370] sm:$0xff] }
 0x67d   : > { %v1715_v4 = vsel %vm711_vm6, 1.0, %v2327_v7  ;;  %v2151_v18 = vpack.c.bf16 %v1757_v60, %v1756_v12  ;;  %v1793_v60 = vld [vmem:[%s3173_s7 + $0x318] sm:$0xff] }
 0x67e   : > { %1755 = vmatmul.mubr.msk.f32.gmra.mrb[16].mxu0 %vm598_vm2, %v1715_v4  ;;  %v1791_v4 = vld [vmem:[%s3173_s7 + $0x308] sm:$0xff]  ;;  %2182 = vmatprep.subr.bf16.mxu1 %v2181_v3 }
 0x67f   : > { %2152 = vmatpush3.bf16.msra.mxu0 %v2151_v18  ;;  %v2183_v11 = vpack.c.bf16 %v1791_v4, %v1790_v2  ;;  %v2187_v18 = vpack.c.bf16 %v1793_v60, %v1792_v14  ;;  %v1805_v2 = vld [vmem:[%s3173_s7 + $0x378] sm:$0xff] }
 0x680   : > { %2154 = vmatprep.subr.bf16.mxu0 %v2153_v19  ;;  %v2189_v19 = vpack.c.bf16 %v1811_v17, %v1810_v15  ;;  %v2211_v3 = vpack.c.bf16 %v1805_v2, %v1804_v42 }
 0x681   : > { %2184 = vmatpush3.bf16.msra.mxu1 %v2183_v11 }
 0x683   : > { %2156 = vmatpush3.bf16.msra.mxu0 %v2155_v24  ;;  %v2191_v24 = vpack.c.bf16 %v1795_v21, %v1794_v20 }
 0x684   : > { %2158 = vmatprep.subr.bf16.mxu0 %v2157_v25  ;;  %v2193_v25 = vpack.c.bf16 %v1813_v23, %v1812_v22 }
 0x687   : > { %2160 = vmatpush3.bf16.msra.mxu0 %v2159_v31  ;;  %v2195_v31 = vpack.c.bf16 %v1797_v28, %v1796_v26 }
 0x688   : > { %2162 = vmatprep.subr.bf16.mxu0 %v2161_v32  ;;  %v2197_v32 = vpack.c.bf16 %v1815_v30, %v1814_v29 }
 0x68b   : > { %2164 = vmatpush3.bf16.msra.mxu0 %v2163_v38 }
 0x68c   : > { %2166 = vmatprep.subr.bf16.mxu0 %v2165_v39 }
 0x68f   : > { %2168 = vmatpush3.bf16.msra.mxu0 %v2167_v13 }
 0x690   : > { %2170 = vmatprep.subr.bf16.mxu0 %v2169_v44 }
 0x693   : > { %2172 = vmatpush3.bf16.msra.mxu0 %v2171_v50 }
 0x694   : > { %2174 = vmatprep.subr.bf16.mxu0 %v2173_v51 }
 0x697   : > { %2176 = vmatpush3.bf16.msra.mxu0 %v2175_v55  ;;  %v1819_v55 = vld [vmem:[%s3173_s7 + $0x3e8] sm:$0xff] }
 0x698   : > { %2178 = vmatprep.subr.bf16.mxu0 %v2177_v59  ;;  %v1803_v59 = vld [vmem:[%s3173_s7 + $0x368] sm:$0xff] }
 0x699   : > { %v2207_v27 = vpack.c.bf16 %v1803_v59, %v1802_v58 }
 0x69b   : > { %2180 = vmatpush3.bf16.msra.mxu0 %v2179_v62  ;;  %v1821_v62 = vld [vmem:[%s3173_s7 + $0x3f8] sm:$0xff] }
 0x69c   : > { %1391 = vmatprep.subr.mxu0 %v2616_v8  ;;  %v1808_v8 = vld [vmem:[%s3173_s7 + $0x390] sm:$0xff]  ;;  %v2209_v1 = vpack.c.bf16 %v1821_v62, %v1820_v61 }
 0x69d   : > { %v2185_v12 = vpack.c.bf16 %v1809_v10, %v1808_v8 }
 0x69f   : > { %2186 = vmatprep.subr.bf16.mxu1 %v2185_v12 }
 0x6a0   : > { %2188 = vmatpush3.bf16.msra.mxu1 %v2187_v18 }
 0x6a1   : > { %2190 = vmatprep.subr.bf16.mxu1 %v2189_v19 }
 0x6a4   : > { %2192 = vmatpush3.bf16.msra.mxu1 %v2191_v24 }
 0x6a5   : > { %2194 = vmatprep.subr.bf16.mxu1 %v2193_v25 }
 0x6a8   : > { %2196 = vmatpush3.bf16.msra.mxu1 %v2195_v31 }
 0x6a9   : > { %2198 = vmatprep.subr.bf16.mxu1 %v2197_v32 }
 0x6ac   : > { %2200 = vmatpush3.bf16.msra.mxu1 %v2199_v36 }
 0x701   : > { %v1944_v37 = vpop.f32.mrb[8].mxu1 }
 0x702   : > { %v1945_v38 = vpop.f32.mrb[9].mxu1 }
 0x703   : > { %v1946_v39 = vadd.f32 %v1945_v38, %v1944_v37 }
 0x705   : > { %v1186_v40 = vadd.f32 %v1946_v39, %v2884_v48  ;;  %v1947_v34 = vpop.f32.mrb[10].mxu1 }
 0x706   : > { %v1948_v41 = vpop.f32.mrb[11].mxu1 }
 0x707   : > { %v1949_v43 = vadd.f32 %v1948_v41, %v1947_v34 }
 0x709   : > { %v1187_v13 = vadd.f32 %v1949_v43, %v2882_v46  ;;  %v1816_v46 = vld [vmem:[%s3173_s7 + $0x3d0] sm:$0xff] }
 0x74d   : > { %v1260_v44 = vpop.f32.mrb[14].mxu0 }
 0x74e   : > { %v1262_v45 = vpop.f32.mrb[15].mxu0  ;;  %v1271_v47 = vmul.f32 %v1260_v44, %v2575_v0 }
 0x74f   : > { %v1272_v16 = vmul.f32 %v1262_v45, %v2573_v63 }
 0x751   : > { %v1266_v49 = vpop.f32.mrb[16].mxu0  ;;  %1372 = vmatprep.mubr.f32.mxu0 %v1272_v16 }
 0x752   : > { %v1268_v50 = vpop.f32.mrb[17].mxu0  ;;  %1373 = vmatmul.mubr.f32.vlgmr.msra.gmra.mrb[18].mxu0 %v1271_v47  ;;  %v1273_v48 = vmul.f32 %v1266_v49, %v2581_v6 }
 0x753   : > { %v1274_v51 = vmul.f32 %v1268_v50, %v2579_v5  ;;  %1392 = vmatpush1.msra.mxu0 %v2622_v9  ;;  %v1817_v9 = vld [vmem:[%s3173_s7 + $0x3d8] sm:$0xff] }
 0x754   : > { %v2201_v53 = vpack.c.bf16 %v1817_v9, %v1816_v46 }
 0x755   : > { %1377 = vmatprep.mubr.f32.mxu0 %v1274_v51 }
 0x756   : > { %1378 = vmatmul.mubr.f32.gmra.mrb[20].mxu0 %v1273_v48  ;;  %2202 = vmatprep.subr.bf16.mxu1 %v2201_v53 }
 0x757   : > { %1455 = vmatprep.mubr.f32.mxu0 %v2327_v7 }
 0x75a   : > { %1788 = vmatmul.mubr.msk.f32.vlgmr.msra.gmra.mrb[22].mxu0 %vm598_vm2, %v2596_v52 }
 0x75b   : > { %1461 = vmatprep.mubr.f32.mxu0 %v2327_v7  ;;  %v1801_v7 = vld [vmem:[%s3173_s7 + $0x358] sm:$0xff] }
 0x75c   : > { %v2203_v52 = vpack.c.bf16 %v1801_v7, %v1800_v54 }
 0x75e   : > { %1789 = vmatmul.mubr.msk.f32.gmra.mrb[24].mxu0 %vm598_vm2, %v2601_v56  ;;  %2204 = vmatpush3.bf16.msra.mxu1 %v2203_v52  ;;  %v1818_v56 = vld [vmem:[%s3173_s7 + $0x3e0] sm:$0xff]  ;;  %vm1593_vm2 = vcmask 523264  }
 0x75f   : > { %v2205_v57 = vpack.c.bf16 %v1819_v55, %v1818_v56 }
 0x761   : > { %2206 = vmatprep.subr.bf16.mxu1 %v2205_v57 }
 0x762   : > { %2208 = vmatpush3.bf16.msra.mxu1 %v2207_v27 }
 0x763   : > { %2210 = vmatprep.subr.bf16.mxu1 %v2209_v1 }
 0x766   : > { %2212 = vmatpush3.bf16.msra.mxu1 %v2211_v3 }
 0x825   : > { %v1982_v4 = vpop.f32.mrb[18].mxu0 }
 0x826   : > { %v1983_v8 = vpop.f32.mrb[19].mxu0 }
 0x827   : > { %v1984_v10 = vadd.f32 %v1983_v8, %v1982_v4 }
 0x829   : > { %v1383_v11 = vadd.f32 %v1984_v10, %v1186_v40  ;;  %v1985_v12 = vpop.f32.mrb[20].mxu0 }
 0x82a   : > { %v1986_v14 = vpop.f32.mrb[21].mxu0 }
 0x82b   : > { %v1987_v60 = vadd.f32 %v1986_v14, %v1985_v12 }
 0x82d   : > { %v1384_v15 = vadd.f32 %v1987_v60, %v1187_v13  ;;  %v1457_v17 = vpop.f32.mrb[22].mxu0 }
 0x82e   : > { %v1459_v18 = vpop.f32.mrb[23].mxu0  ;;  %v1468_v20 = vmul.f32 %v1457_v17, %v2575_v0 }
 0x82f   : > { %v1469_v19 = vmul.f32 %v1459_v18, %v2573_v63  ;;  %v1822_v63 = vld [vmem:[%s3174_s8] ss:$0 sm:$0xff] }
 0x831   : > { %v1463_v21 = vpop.f32.mrb[24].mxu0  ;;  %1569 = vmatprep.mubr.f32.mxu1 %v1469_v19 }
 0x832   : > { %v1465_v22 = vpop.f32.mrb[25].mxu0  ;;  %1570 = vmatmul.mubr.f32.vlgmr.msra.gmra.mrb[12].mxu1 %v1468_v20  ;;  %v1470_v24 = vmul.f32 %v1463_v21, %v2581_v6 }
 0x833   : > { %v1471_v23 = vmul.f32 %v1465_v22, %v2579_v5 }
 0x835   : > { %1574 = vmatprep.mubr.f32.mxu1 %v1471_v23 }
 0x836   : > { %1575 = vmatmul.mubr.f32.gmra.mrb[14].mxu1 %v1470_v24 }
 0x905   : > { %v2020_v25 = vpop.f32.mrb[12].mxu1 }
 0x906   : > { %v2021_v26 = vpop.f32.mrb[13].mxu1 }
 0x907   : > { %v2022_v28 = vadd.f32 %v2021_v26, %v2020_v25 }
 0x909   : > { %v1580_v0 = vadd.f32 %v2022_v28, %v1383_v11  ;;  %v2023_v29 = vpop.f32.mrb[14].mxu1 }
 0x90a   : > { %v2024_v30 = vpop.f32.mrb[15].mxu1 }
 0x90b   : > { %v1589_v31 = vadd.f32 %v1822_v63, %v1580_v0  ;;  %v2025_v32 = vadd.f32 %v2024_v30, %v2023_v29 }
 0x90d   : > { %v1591_v5 = vmax.f32 %v1589_v31, 0.0  ;;  %v1581_v6 = vadd.f32 %v2025_v32, %v1384_v15 }
 0x90f   : > { %1594 = vst.msk [vmem:[%s360_s26] sm:$0xff] %vm1593_vm2, %v1591_v5  ;;  %v1590_v33 = vadd.f32 %v1822_v63, %v1581_v6 }
 0x911   : > { %v1592_v35 = vmax.f32 %v1590_v33, 0.0 }
 0x913   : > { %1595 = vst.msk [vmem:[%s360_s26 + $0x8] sm:$0xff] %vm1593_vm2, %v1592_v35 }
 0x914   : > { %2276 = shalt.err (!%p2273_p3)
}
 0x915   : > { %s2277_s22 = scalar_lea.hbm %s3121_s14, 256  ;;  %s2281_s26 = scalar_lea.hbm %s3175_s9, 512 }
 0x916   : > { %p2278_p4 = scmp.ne.s32.totalorder %s3121_s14, %s2277_s22  ;;  %p2282_p9 = scmp.lt.u32.totalorder %s3121_s14, %s3175_s9 }
 0x917   : > { %p2283_p10 = scmp.lt.u32.totalorder %s2281_s26, %s2277_s22  ;;  %p2285_p12 = scmp.lt.u32.totalorder %s2277_s22, %s3121_s14 }
 0x918   : > { %p2279_p7 = pnand %p2278_p4, %p2419_p5 }
 0x919   : > { %p2284_p11 = por %p2283_p10, %p2282_p9 }
 0x91a   : > { %p2280_p8 = pneg %p2279_p7 }
 0x91b   : > { %p2286_p13 = por %p2285_p12, %p2284_p11 }
 0x91d   : > { %p2287_p0 = pnand %p2286_p13, %p2280_p8 }
 0x91f   : > { %2290 = shalt.err (!%p2287_p0)
}
 0x920   : > { %s2329_s21 = smov 128   ;;  %s2330_s13 = smov 8  }
 0x921   : > { %2213 = dma.vmem_to_hbm [thread:$0]  (%p2419_p5), %s3123_s29, 256, %s3121_s14, %s3125_s17, %s2329_s21, %s2329_s21, %s2330_s13  }
 0x922 PF: > { %p2219_p1 = scmp.ge.s32.totalorder %s2325_s12, 2  ;;  %s1625_s23 = sand.u32 1, %s2313_s30  }
 0x923   : > { %s1626_s24 = scalar_lea.sflag [#allocation3], %s1625_s23 }
 0x924   : > { %p2216_p2 = pnand %p2219_p1, %p2423_p6 }
 0x926   : > { %2308 = dma.done.wait (!%p2216_p2), %s1626_s24, 256  }
 0x927   : > { %2310 = vsyncadd (!%p2216_p2), %s1626_s24, 4294967040  ;;  %p19_p3 = scmp.ge.s32.totalorder %s2406_s15, 4   ;;  %s3178_s30 = smov %s2317_s10 }
 0x928   : > { %s3179_s10 = smov %s2321_s11  ;;  %s3180_s11 = smov %s2417_s18 }
 0x929   : > { %s3181_s12 = smov %s2406_s15  ;;  %21 = sbr.rel (!%p19_p3) target bundleno = 3 (0x3), region = 100 }
 0x930   :  { %1631 = vsyncpa [#allocation3], 1 }
 0x931   :  { %1633 = vsyncpa [#allocation3 + $0x1], 1 }

</bundles_post_ra>
